<compile_context>
chip_gen: v7x
topology: tpu7x:2x2x1
jax: 0.10.0
libtpu: 0.0.40
codegen_flags: <defaults>
</compile_context>

<pallas_src>
import itertools

import numpy as np
import jax
import jax.numpy as jnp
from jax import lax
from jax.experimental import pallas as pl
from jax.experimental.pallas import tpu as pltpu

# ---------------- model hyper-parameters (consistent with GraphVAE.__init__) ----------
IN_DIM = 4
HID_DIM = 32
Z_DIM = 16
MAX_NODES = 8
OFF_DIAG = MAX_NODES * (MAX_NODES - 1) // 2   # 28
BN_EPS = 1e-5
MPM_ITERS = 50
MPM_TOL = 1e-4
SLAB = 128                                    # lane-dense output width


def _vmem_specs(n):
    return [pl.BlockSpec(memory_space=pltpu.MemorySpace.VMEM) for _ in range(n)]


# =======================================================================================
# Fused Pallas kernel: encoder -> reparam -> decoder -> adjacency logits -> MPM
# =======================================================================================
def _graphvae_fused_kernel(a_gt_ref, x_ref, maskc_ref, maskr_ref, rinv_ref, eps_ref,
                           w1_ref, b1_ref, g1_ref, be1_ref,
                           w2_ref, b2_ref, g2_ref, be2_ref,
                           wmu_ref, bmu_ref, wlv_ref, blv_ref,
                           wdec1_ref, bdec1_ref, wadj_ref, badj_ref,
                           rowsel_ref, colsel_ref,
                           out_s_ref, out_x_ref):
    f32 = jnp.float32
    N = MAX_NODES

    A_gt = a_gt_ref[...]                      # (N, N) ground-truth adjacency (padded)
    mc = maskc_ref[...]                       # (N, 1) real-node mask
    mr = maskr_ref[...]                       # (1, N)
    m2 = mc * mr                              # (N, N) real-block mask
    r_inv = rinv_ref[...]                     # (1, 1) = 1 / num_real_nodes

    rows = lax.broadcasted_iota(jnp.int32, (N, N), 0)
    cols = lax.broadcasted_iota(jnp.int32, (N, N), 1)
    eye = (rows == cols).astype(f32)

    # ---- GCNConv normalisation D^-1/2 (A + I) D^-1/2 restricted to real nodes --------
    A_hat = (A_gt + eye) * m2
    deg_c = jnp.sum(A_hat, axis=1, keepdims=True)               # (N, 1)
    deg_r = jnp.sum(A_hat, axis=0, keepdims=True)               # (1, N)
    dinv_c = mc * lax.rsqrt(deg_c + (1.0 - mc))                 # padded rows -> 0
    dinv_r = mr * lax.rsqrt(deg_r + (1.0 - mr))
    A_norm = dinv_c * A_hat * dinv_r

    # ---- encoder: (GCN -> BatchNorm(train, masked stats) -> ReLU) x 2 ----------------
    def gcn_bn_relu(h_in, w, b, g, be):
        h = jnp.dot(h_in, w, preferred_element_type=f32)
        h = jnp.dot(A_norm, h, preferred_element_type=f32) + b
        mean = jnp.sum(h * mc, axis=0, keepdims=True) * r_inv   # stats over real nodes
        cen = (h - mean) * mc
        var = jnp.sum(cen * cen, axis=0, keepdims=True) * r_inv
        h = (h - mean) * lax.rsqrt(var + BN_EPS) * g + be
        return jnp.maximum(h, 0.0) * mc

    h = gcn_bn_relu(x_ref[...], w1_ref[...], b1_ref[...], g1_ref[...], be1_ref[...])
    h = gcn_bn_relu(h, w2_ref[...], b2_ref[...], g2_ref[...], be2_ref[...])

    # global_add_pool over real nodes / R
    gvec = jnp.sum(h, axis=0, keepdims=True) * r_inv            # (1, HID)
    mu = jnp.dot(gvec, wmu_ref[...], preferred_element_type=f32) + bmu_ref[...]
    logvar = jnp.clip(
        jnp.dot(gvec, wlv_ref[...], preferred_element_type=f32) + blv_ref[...],
        -4.0, 4.0)

    # ---- reparameterisation + merged decoder heads ------------------------------------
    z = mu + eps_ref[...] * jnp.exp(0.5 * logvar)               # (1, Z)
    hdec = jnp.maximum(
        jnp.dot(z, wdec1_ref[...], preferred_element_type=f32) + bdec1_ref[...], 0.0)
    # flat (row-major) A_hat logits: off-diag entries = edge head, diag = node head
    a_flat = jnp.dot(hdec, wadj_ref[...], preferred_element_type=f32) + badj_ref[...]

    # (1, N*N) -> (N, N) dense logits via selector matmul (no scatter / no reshape)
    A_logits = jnp.dot(a_flat * rowsel_ref[...], colsel_ref[...],
                       preferred_element_type=f32)

    # ---- factorised edge-similarity (S tensor is never materialised) -----------------
    # With diag(A)=diag(B)=1: S[i,j,a,b] = A[i,j]*B[a,b] (i!=j, a!=b), S[i,i,a,a]=node_sim
    offd = m2 * (1.0 - eye)
    A0 = A_gt * offd                                            # real off-diag A
    Bz = (1.0 / (1.0 + jnp.exp(-A_logits))) * offd              # sigmoid, diag zeroed
    degA = 1.0 + jnp.sum(A0, axis=1, keepdims=True)             # (N, 1)
    degB = 1.0 + jnp.sum(Bz, axis=0, keepdims=True)             # (1, N)  (Bz symmetric)
    node_sim = m2 / (jnp.abs(degA - degB) + 1.0)
    X0 = m2 * r_inv

    # ---- MPM: 50 iterations with early-stop freeze (tol = 1e-4) ----------------------
    bz_rows = [Bz[a:a + 1, :] for a in range(N)]                # loop-invariant, hoisted
    lane = lax.broadcasted_iota(jnp.int32, (1, N), 1)
    onehot = [(lane == a).astype(f32) for a in range(N)]        # hoisted

    def body(_, carry):
        X, done = carry
        # M[j, a] = max_b Bz[a, b] * X[j, b]
        M = jnp.zeros((N, N), f32)
        for a in range(N):
            col = jnp.max(bz_rows[a] * X, axis=1, keepdims=True)  # (N, 1)
            M = M + col * onehot[a]
        edge = jnp.dot(A0, M, preferred_element_type=f32)         # sum_{j!=i} A[i,j] M[j,a]
        Xn = X * node_sim + edge
        Xn = Xn * lax.rsqrt(jnp.sum(Xn * Xn) + 1e-20)              # Frobenius-norm (eps-safe)
        diff = jnp.max(jnp.abs(Xn - X))
        X_out = X * done + Xn * (1.0 - done)                       # freeze once converged
        done = jnp.maximum(done, (diff < MPM_TOL).astype(f32))
        return X_out, done

    X_final, _ = lax.fori_loop(0, MPM_ITERS, body, (X0, jnp.float32(0.0)))

    # ---- pack outputs lane-dense (single unmasked 128-lane stores) -------------------
    r16 = lax.broadcasted_iota(jnp.int32, (Z_DIM, SLAB), 0)
    c16 = lax.broadcasted_iota(jnp.int32, (Z_DIM, SLAB), 1)
    e_mu = (c16 == r16).astype(f32)
    e_lv = (c16 == r16 + Z_DIM).astype(f32)
    r64 = lax.broadcasted_iota(jnp.int32, (N * N, SLAB), 0)
    c64 = lax.broadcasted_iota(jnp.int32, (N * N, SLAB), 1)
    e_af = (c64 == r64 + 2 * Z_DIM).astype(f32)
    out_s_ref[...] = (jnp.dot(mu, e_mu, preferred_element_type=f32)
                      + jnp.dot(logvar, e_lv, preferred_element_type=f32)
                      + jnp.dot(a_flat, e_af, preferred_element_type=f32))

    r8 = lax.broadcasted_iota(jnp.int32, (N, SLAB), 0)
    c8 = lax.broadcasted_iota(jnp.int32, (N, SLAB), 1)
    out_x_ref[...] = jnp.dot(X_final, (c8 == r8).astype(f32),
                             preferred_element_type=f32)


# =======================================================================================
# One-time parameter folding (decoder head merge + vec_to_adj folded into the weights)
# =======================================================================================
def _build_constants():
    N = MAX_NODES
    iu, ju = np.triu_indices(N, k=1)
    p_edge = np.zeros((OFF_DIAG, N * N), np.float32)
    for k in range(OFF_DIAG):
        p_edge[k, iu[k] * N + ju[k]] = 1.0
        p_edge[k, ju[k] * N + iu[k]] = 1.0
    p_node = np.zeros((N, N * N), np.float32)
    for i in range(N):
        p_node[i, i * N + i] = 1.0
    rowsel = np.kron(np.eye(N, dtype=np.float32), np.ones((1, N), np.float32))   # (N, N*N)
    colsel = np.kron(np.ones((N, 1), np.float32), np.eye(N, dtype=np.float32))   # (N*N, N)
    return p_edge, p_node, rowsel, colsel


def prepare_params(params):
    p_edge, p_node, rowsel, colsel = _build_constants()
    p_edge = jnp.asarray(p_edge)
    p_node = jnp.asarray(p_node)
    fp = dict(params)
    fp['wdec1'] = jnp.concatenate([params['we1'], params['wn1']], axis=1)    # (Z, 2H)
    fp['bdec1'] = jnp.concatenate([params['bde1'], params['bdn1']], axis=1)  # (1, 2H)
    fp['wadj'] = jnp.concatenate([params['we2'] @ p_edge,
                                  params['wn2'] @ p_node], axis=0)           # (2H, N*N)
    fp['badj'] = params['bde2'] @ p_edge + params['bdn2'] @ p_node           # (1, N*N)
    fp['rowsel'] = jnp.asarray(rowsel)
    fp['colsel'] = jnp.asarray(colsel)
    return fp


# =======================================================================================
# Forward wrapper (single pallas_call) + losses
# =======================================================================================
def _graphvae_forward_impl(fp, x, A_gt, R_int, key_eps):
    N = MAX_NODES
    maskc = jnp.asarray((np.arange(N) < R_int).astype(np.float32)).reshape(N, 1)
    maskr = maskc.reshape(1, N)
    rinv = jnp.full((1, 1), 1.0 / R_int, jnp.float32)
    eps = jax.random.normal(key_eps, (1, Z_DIM), jnp.float32)

    ins = (A_gt, x, maskc, maskr, rinv, eps,
           fp['w1'], fp['b1'], fp['g1'], fp['be1'],
           fp['w2'], fp['b2'], fp['g2'], fp['be2'],
           fp['wmu'], fp['bmu'], fp['wlv'], fp['blv'],
           fp['wdec1'], fp['bdec1'], fp['wadj'], fp['badj'],
           fp['rowsel'], fp['colsel'])
    slab, xslab = pl.pallas_call(
        _graphvae_fused_kernel,
        out_shape=(jax.ShapeDtypeStruct((1, SLAB), jnp.float32),
                   jax.ShapeDtypeStruct((MAX_NODES, SLAB), jnp.float32)),
        in_specs=_vmem_specs(len(ins)),
        out_specs=tuple(_vmem_specs(2)),
    )(*ins)

    mu = slab[:, 0:Z_DIM]
    logvar = slab[:, Z_DIM:2 * Z_DIM]
    A_hat_logits = slab[0, 2 * Z_DIM:2 * Z_DIM + N * N].reshape(N, N)
    iu, ju = np.triu_indices(N, k=1)
    vec_logits = A_hat_logits[iu, ju]
    node_logits = jnp.diagonal(A_hat_logits)
    # NOTE: _edge_sim_tensor re-derives R from "#rows with positive degree"; this equals
    # R_int whenever every real node has >= 1 edge (asserted in __main__).
    X = xslab[:R_int, :R_int]
    return {'mu': mu, 'logvar': logvar, 'vec_logits': vec_logits,
            'node_logits': node_logits, 'A_hat_logits': A_hat_logits, 'X': X}


graphvae_forward = jax.jit(_graphvae_forward_impl, static_argnums=(3,))


def bce_with_logits(logits, targets, pos_weight):
    log_p = jax.nn.log_sigmoid(logits)
    log_1p = jax.nn.log_sigmoid(-logits)
    return jnp.mean(-(pos_weight * targets * log_p + (1.0 - targets) * log_1p))


def graphvae_losses(out, A_gt, R_int, pos_weight, perm_full):
    N = MAX_NODES
    A_hat_logits = out['A_hat_logits']
    node_logits = out['node_logits']
    vec_logits = out['vec_logits']
    mu, logvar = out['mu'], out['logvar']

    A_gt_perm = A_gt[perm_full][:, perm_full]
    A_pred_perm = A_hat_logits[perm_full][:, perm_full]
    iu, ju = np.triu_indices(R_int, k=1)
    tri_truth = A_gt_perm[iu, ju]
    tri_pred = A_pred_perm[iu, ju]
    loss_edges = bce_with_logits(tri_pred, tri_truth, pos_weight)

    node_truth = jnp.zeros((N,), jnp.float32).at[:R_int].set(1.0)
    pos_w_node = jnp.clip((N - R_int) / (R_int + 1e-8), 1.0, 5.0)
    loss_nodes = bce_with_logits(node_logits, node_truth, pos_w_node)

    node_masked = node_logits.at[R_int:].set(-10.0)
    max_logit = jnp.max(jnp.abs(jnp.concatenate([vec_logits, node_masked])))

    loss_rec = loss_edges + loss_nodes
    loss_kl = -0.5 * jnp.mean(1.0 + logvar - mu ** 2 - jnp.exp(logvar))
    return {'rec': loss_rec, 'kl': loss_kl, 'loss': loss_rec + loss_kl,
            'max_logit': max_logit, 'logvar_max': jnp.max(logvar)}


# =======================================================================================
# Deterministic parameter init (xavier_uniform, gain=sqrt(2); zero biases; BN gamma=1)
# =======================================================================================
def xavier_uniform(key, fan_in, fan_out, gain):
    a = gain * np.sqrt(6.0 / (fan_in + fan_out))
    return jax.random.uniform(key, (fan_in, fan_out), jnp.float32, -a, a)


if __name__ == "__main__":
    key = jax.random.PRNGKey(0)
    ks = jax.random.split(key, 12)
    gain = float(np.sqrt(2.0))
    params = {
        'w1': xavier_uniform(ks[0], IN_DIM, HID_DIM, gain),
        'b1': jnp.zeros((1, HID_DIM), jnp.float32),
        'g1': jnp.ones((1, HID_DIM), jnp.float32),
        'be1': jnp.zeros((1, HID_DIM), jnp.float32),
        'w2': xavier_uniform(ks[1], HID_DIM, HID_DIM, gain),
        'b2': jnp.zeros((1, HID_DIM), jnp.float32),
        'g2': jnp.ones((1, HID_DIM), jnp.float32),
        'be2': jnp.zeros((1, HID_DIM), jnp.float32),
        'wmu': xavier_uniform(ks[2], HID_DIM, Z_DIM, gain),
        'bmu': jnp.zeros((1, Z_DIM), jnp.float32),
        'wlv': xavier_uniform(ks[3], HID_DIM, Z_DIM, gain),
        'blv': jnp.zeros((1, Z_DIM), jnp.float32),
        'we1': xavier_uniform(ks[4], Z_DIM, HID_DIM, gain),
        'bde1': jnp.zeros((1, HID_DIM), jnp.float32),
        'we2': xavier_uniform(ks[5], HID_DIM, OFF_DIAG, gain),
        'bde2': jnp.zeros((1, OFF_DIAG), jnp.float32),
        'wn1': xavier_uniform(ks[6], Z_DIM, HID_DIM, gain),
        'bdn1': jnp.zeros((1, HID_DIM), jnp.float32),
        'wn2': xavier_uniform(ks[7], HID_DIM, MAX_NODES, gain),
        'bdn2': jnp.zeros((1, MAX_NODES), jnp.float32),
    }
    fparams = prepare_params(params)

    # ----- synthetic graph: 6 real nodes (each with >= 1 edge), padded to 8 ------------
    R_int = 6
    A_np = np.zeros((MAX_NODES, MAX_NODES), np.float32)
    for (i, j) in [(0, 1), (1, 2), (2, 3), (3, 4), (4, 5), (5, 0), (0, 2), (1, 4)]:
        A_np[i, j] = 1.0
        A_np[j, i] = 1.0
    assert int((A_np[:R_int, :R_int].sum(1) > 0).sum()) == R_int
    A_gt = jnp.asarray(A_np)

    x = jnp.zeros((MAX_NODES, IN_DIM), jnp.float32).at[:R_int].set(
        jax.random.normal(ks[8], (R_int, IN_DIM), jnp.float32))

    # dataset rho / pos_weight (what precompute_dataset_rho would compute on this graph)
    iu, ju = np.triu_indices(R_int, k=1)
    rho = float(A_np[:R_int, :R_int][iu, ju].sum()) / (R_int * (R_int - 1) / 2 + 1e-8)
    pos_weight = float(np.clip((1 - rho) / (rho + 1e-8), 1.0, 20.0))

    out = graphvae_forward(fparams, x, A_gt, R_int, ks[9])

    # ----- Hungarian assignment (host side, like the original .cpu().numpy() path) -----
    # TODO(synk): scipy.optimize.linear_sum_assignment has no Pallas/JAX equivalent;
    #             replaced by exact brute-force permutation search (valid for small R).
    X_np = np.asarray(jax.device_get(out['X']))
    cost = -X_np
    rows = np.arange(R_int)
    best_cost, best_col = np.inf, None
    for p in itertools.permutations(range(R_int)):
        c = cost[rows, list(p)].sum()
        if c < best_cost:
            best_cost, best_col = c, np.array(p)
    perm = np.empty(R_int, dtype=np.int64)
    perm[best_col] = rows
    perm_full = np.arange(MAX_NODES)
    perm_full[:R_int] = perm

    losses = graphvae_losses(out, A_gt, R_int, pos_weight, jnp.asarray(perm_full))
    jax.block_until_ready(losses)
    print("KERNEL_OK")
</pallas_src>

<mosaic_0001>
module attributes {stable_mosaic.version = 11 : i64} {
  func.func @_graphvae_fused_kernel(%arg0: memref<8x8xf32, #tpu.memory_space<vmem>>, %arg1: memref<8x4xf32, #tpu.memory_space<vmem>>, %arg2: memref<8x1xf32, #tpu.memory_space<vmem>>, %arg3: memref<1x8xf32, #tpu.memory_space<vmem>>, %arg4: memref<1x1xf32, #tpu.memory_space<vmem>>, %arg5: memref<1x16xf32, #tpu.memory_space<vmem>>, %arg6: memref<4x32xf32, #tpu.memory_space<vmem>>, %arg7: memref<1x32xf32, #tpu.memory_space<vmem>>, %arg8: memref<1x32xf32, #tpu.memory_space<vmem>>, %arg9: memref<1x32xf32, #tpu.memory_space<vmem>>, %arg10: memref<32x32xf32, #tpu.memory_space<vmem>>, %arg11: memref<1x32xf32, #tpu.memory_space<vmem>>, %arg12: memref<1x32xf32, #tpu.memory_space<vmem>>, %arg13: memref<1x32xf32, #tpu.memory_space<vmem>>, %arg14: memref<32x16xf32, #tpu.memory_space<vmem>>, %arg15: memref<1x16xf32, #tpu.memory_space<vmem>>, %arg16: memref<32x16xf32, #tpu.memory_space<vmem>>, %arg17: memref<1x16xf32, #tpu.memory_space<vmem>>, %arg18: memref<16x64xf32, #tpu.memory_space<vmem>>, %arg19: memref<1x64xf32, #tpu.memory_space<vmem>>, %arg20: memref<64x64xf32, #tpu.memory_space<vmem>>, %arg21: memref<1x64xf32, #tpu.memory_space<vmem>>, %arg22: memref<8x64xf32, #tpu.memory_space<vmem>>, %arg23: memref<64x8xf32, #tpu.memory_space<vmem>>, %arg24: memref<1x128xf32, #tpu.memory_space<vmem>>, %arg25: memref<8x128xf32, #tpu.memory_space<vmem>>) attributes {dimension_semantics = [], scalar_prefetch = 0 : i64, scratch_operands = 0 : i64, tpu.core_type = #tpu.core_type<tc>} {
    %c0 = arith.constant 0 : index
    %c0_0 = arith.constant 0 : index
    %0 = vector.load %arg0[%c0, %c0_0] : memref<8x8xf32, #tpu.memory_space<vmem>>, vector<8x8xf32>
    %c0_1 = arith.constant 0 : index
    %c0_2 = arith.constant 0 : index
    %1 = vector.load %arg2[%c0_1, %c0_2] : memref<8x1xf32, #tpu.memory_space<vmem>>, vector<8x1xf32>
    %c0_3 = arith.constant 0 : index
    %c0_4 = arith.constant 0 : index
    %2 = vector.load %arg3[%c0_3, %c0_4] : memref<1x8xf32, #tpu.memory_space<vmem>>, vector<1x8xf32>
    %3 = vector.broadcast %1 : vector<8x1xf32> to vector<8x8xf32>
    %4 = vector.broadcast %2 : vector<1x8xf32> to vector<8x8xf32>
    %5 = arith.mulf %3, %4 : vector<8x8xf32>
    %c0_5 = arith.constant 0 : index
    %c0_6 = arith.constant 0 : index
    %6 = vector.load %arg4[%c0_5, %c0_6] : memref<1x1xf32, #tpu.memory_space<vmem>>, vector<1x1xf32>
    %7 = tpu.iota {dimensions = array<i32: 0>} : vector<8x8xi32>
    %8 = tpu.iota {dimensions = array<i32: 1>} : vector<8x8xi32>
    %9 = arith.cmpi eq, %7, %8 : vector<8x8xi32>
    %10 = arith.extui %9 : vector<8x8xi1> to vector<8x8xi32>
    %11 = arith.sitofp %10 : vector<8x8xi32> to vector<8x8xf32>
    %12 = arith.addf %0, %11 : vector<8x8xf32>
    %13 = arith.mulf %12, %5 : vector<8x8xf32>
    %cst = arith.constant dense<0.000000e+00> : vector<8xf32>
    %14 = vector.multi_reduction <add>, %13, %cst [1] : vector<8x8xf32> to vector<8xf32>
    %15 = vector.shape_cast %14 : vector<8xf32> to vector<8x1xf32>
    %cst_7 = arith.constant dense<0.000000e+00> : vector<8xf32>
    %16 = vector.multi_reduction <add>, %13, %cst_7 [0] : vector<8x8xf32> to vector<8xf32>
    %17 = vector.shape_cast %16 : vector<8xf32> to vector<1x8xf32>
    %cst_8 = arith.constant 1.000000e+00 : f32
    %18 = vector.broadcast %cst_8 : f32 to vector<8x1xf32>
    %19 = arith.subf %18, %1 : vector<8x1xf32>
    %20 = arith.addf %15, %19 : vector<8x1xf32>
    %21 = math.rsqrt %20 : vector<8x1xf32>
    %22 = arith.mulf %1, %21 : vector<8x1xf32>
    %cst_9 = arith.constant 1.000000e+00 : f32
    %23 = vector.broadcast %cst_9 : f32 to vector<1x8xf32>
    %24 = arith.subf %23, %2 : vector<1x8xf32>
    %25 = arith.addf %17, %24 : vector<1x8xf32>
    %26 = math.rsqrt %25 : vector<1x8xf32>
    %27 = arith.mulf %2, %26 : vector<1x8xf32>
    %28 = vector.broadcast %22 : vector<8x1xf32> to vector<8x8xf32>
    %29 = arith.mulf %28, %13 : vector<8x8xf32>
    %30 = vector.broadcast %27 : vector<1x8xf32> to vector<8x8xf32>
    %31 = arith.mulf %29, %30 : vector<8x8xf32>
    %c0_10 = arith.constant 0 : index
    %c0_11 = arith.constant 0 : index
    %32 = vector.load %arg1[%c0_10, %c0_11] : memref<8x4xf32, #tpu.memory_space<vmem>>, vector<8x4xf32>
    %c0_12 = arith.constant 0 : index
    %c0_13 = arith.constant 0 : index
    %33 = vector.load %arg6[%c0_12, %c0_13] : memref<4x32xf32, #tpu.memory_space<vmem>>, vector<4x32xf32>
    %c0_14 = arith.constant 0 : index
    %c0_15 = arith.constant 0 : index
    %34 = vector.load %arg7[%c0_14, %c0_15] : memref<1x32xf32, #tpu.memory_space<vmem>>, vector<1x32xf32>
    %c0_16 = arith.constant 0 : index
    %c0_17 = arith.constant 0 : index
    %35 = vector.load %arg8[%c0_16, %c0_17] : memref<1x32xf32, #tpu.memory_space<vmem>>, vector<1x32xf32>
    %c0_18 = arith.constant 0 : index
    %c0_19 = arith.constant 0 : index
    %36 = vector.load %arg9[%c0_18, %c0_19] : memref<1x32xf32, #tpu.memory_space<vmem>>, vector<1x32xf32>
    %cst_20 = arith.constant dense<0.000000e+00> : vector<8x32xf32>
    %37 = tpu.matmul %32, %33, %cst_20 {dimension_numbers = #tpu.dot_dimension_numbers<[1], [0], [0], [1], [0, 0, 1, 1], [], []>} : vector<8x4xf32>, vector<4x32xf32>, vector<8x32xf32> -> vector<8x32xf32>
    %cst_21 = arith.constant dense<0.000000e+00> : vector<8x32xf32>
    %38 = tpu.matmul %31, %37, %cst_21 {dimension_numbers = #tpu.dot_dimension_numbers<[1], [0], [0], [1], [0, 0, 1, 1], [], []>} : vector<8x8xf32>, vector<8x32xf32>, vector<8x32xf32> -> vector<8x32xf32>
    %39 = vector.broadcast %34 : vector<1x32xf32> to vector<8x32xf32>
    %40 = arith.addf %38, %39 : vector<8x32xf32>
    %41 = vector.broadcast %1 : vector<8x1xf32> to vector<8x32xf32>
    %42 = arith.mulf %40, %41 : vector<8x32xf32>
    %cst_22 = arith.constant dense<0.000000e+00> : vector<32xf32>
    %43 = vector.multi_reduction <add>, %42, %cst_22 [0] : vector<8x32xf32> to vector<32xf32>
    %44 = vector.shape_cast %43 : vector<32xf32> to vector<1x32xf32>
    %45 = vector.broadcast %6 : vector<1x1xf32> to vector<1x32xf32>
    %46 = arith.mulf %44, %45 : vector<1x32xf32>
    %47 = vector.broadcast %46 : vector<1x32xf32> to vector<8x32xf32>
    %48 = arith.subf %40, %47 : vector<8x32xf32>
    %49 = vector.broadcast %1 : vector<8x1xf32> to vector<8x32xf32>
    %50 = arith.mulf %48, %49 : vector<8x32xf32>
    %51 = arith.mulf %50, %50 : vector<8x32xf32>
    %cst_23 = arith.constant dense<0.000000e+00> : vector<32xf32>
    %52 = vector.multi_reduction <add>, %51, %cst_23 [0] : vector<8x32xf32> to vector<32xf32>
    %53 = vector.shape_cast %52 : vector<32xf32> to vector<1x32xf32>
    %54 = vector.broadcast %6 : vector<1x1xf32> to vector<1x32xf32>
    %55 = arith.mulf %53, %54 : vector<1x32xf32>
    %56 = vector.broadcast %46 : vector<1x32xf32> to vector<8x32xf32>
    %57 = arith.subf %40, %56 : vector<8x32xf32>
    %cst_24 = arith.constant 9.99999974E-6 : f32
    %58 = vector.broadcast %cst_24 : f32 to vector<1x32xf32>
    %59 = arith.addf %55, %58 : vector<1x32xf32>
    %60 = math.rsqrt %59 : vector<1x32xf32>
    %61 = vector.broadcast %60 : vector<1x32xf32> to vector<8x32xf32>
    %62 = arith.mulf %57, %61 : vector<8x32xf32>
    %63 = vector.broadcast %35 : vector<1x32xf32> to vector<8x32xf32>
    %64 = arith.mulf %62, %63 : vector<8x32xf32>
    %65 = vector.broadcast %36 : vector<1x32xf32> to vector<8x32xf32>
    %66 = arith.addf %64, %65 : vector<8x32xf32>
    %cst_25 = arith.constant 0.000000e+00 : f32
    %67 = vector.broadcast %cst_25 : f32 to vector<8x32xf32>
    %68 = arith.maximumf %66, %67 : vector<8x32xf32>
    %69 = vector.broadcast %1 : vector<8x1xf32> to vector<8x32xf32>
    %70 = arith.mulf %68, %69 : vector<8x32xf32>
    %c0_26 = arith.constant 0 : index
    %c0_27 = arith.constant 0 : index
    %71 = vector.load %arg10[%c0_26, %c0_27] : memref<32x32xf32, #tpu.memory_space<vmem>>, vector<32x32xf32>
    %c0_28 = arith.constant 0 : index
    %c0_29 = arith.constant 0 : index
    %72 = vector.load %arg11[%c0_28, %c0_29] : memref<1x32xf32, #tpu.memory_space<vmem>>, vector<1x32xf32>
    %c0_30 = arith.constant 0 : index
    %c0_31 = arith.constant 0 : index
    %73 = vector.load %arg12[%c0_30, %c0_31] : memref<1x32xf32, #tpu.memory_space<vmem>>, vector<1x32xf32>
    %c0_32 = arith.constant 0 : index
    %c0_33 = arith.constant 0 : index
    %74 = vector.load %arg13[%c0_32, %c0_33] : memref<1x32xf32, #tpu.memory_space<vmem>>, vector<1x32xf32>
    %cst_34 = arith.constant dense<0.000000e+00> : vector<8x32xf32>
    %75 = tpu.matmul %70, %71, %cst_34 {dimension_numbers = #tpu.dot_dimension_numbers<[1], [0], [0], [1], [0, 0, 1, 1], [], []>} : vector<8x32xf32>, vector<32x32xf32>, vector<8x32xf32> -> vector<8x32xf32>
    %cst_35 = arith.constant dense<0.000000e+00> : vector<8x32xf32>
    %76 = tpu.matmul %31, %75, %cst_35 {dimension_numbers = #tpu.dot_dimension_numbers<[1], [0], [0], [1], [0, 0, 1, 1], [], []>} : vector<8x8xf32>, vector<8x32xf32>, vector<8x32xf32> -> vector<8x32xf32>
    %77 = vector.broadcast %72 : vector<1x32xf32> to vector<8x32xf32>
    %78 = arith.addf %76, %77 : vector<8x32xf32>
    %79 = vector.broadcast %1 : vector<8x1xf32> to vector<8x32xf32>
    %80 = arith.mulf %78, %79 : vector<8x32xf32>
    %cst_36 = arith.constant dense<0.000000e+00> : vector<32xf32>
    %81 = vector.multi_reduction <add>, %80, %cst_36 [0] : vector<8x32xf32> to vector<32xf32>
    %82 = vector.shape_cast %81 : vector<32xf32> to vector<1x32xf32>
    %83 = vector.broadcast %6 : vector<1x1xf32> to vector<1x32xf32>
    %84 = arith.mulf %82, %83 : vector<1x32xf32>
    %85 = vector.broadcast %84 : vector<1x32xf32> to vector<8x32xf32>
    %86 = arith.subf %78, %85 : vector<8x32xf32>
    %87 = vector.broadcast %1 : vector<8x1xf32> to vector<8x32xf32>
    %88 = arith.mulf %86, %87 : vector<8x32xf32>
    %89 = arith.mulf %88, %88 : vector<8x32xf32>
    %cst_37 = arith.constant dense<0.000000e+00> : vector<32xf32>
    %90 = vector.multi_reduction <add>, %89, %cst_37 [0] : vector<8x32xf32> to vector<32xf32>
    %91 = vector.shape_cast %90 : vector<32xf32> to vector<1x32xf32>
    %92 = vector.broadcast %6 : vector<1x1xf32> to vector<1x32xf32>
    %93 = arith.mulf %91, %92 : vector<1x32xf32>
    %94 = vector.broadcast %84 : vector<1x32xf32> to vector<8x32xf32>
    %95 = arith.subf %78, %94 : vector<8x32xf32>
    %cst_38 = arith.constant 9.99999974E-6 : f32
    %96 = vector.broadcast %cst_38 : f32 to vector<1x32xf32>
    %97 = arith.addf %93, %96 : vector<1x32xf32>
    %98 = math.rsqrt %97 : vector<1x32xf32>
    %99 = vector.broadcast %98 : vector<1x32xf32> to vector<8x32xf32>
    %100 = arith.mulf %95, %99 : vector<8x32xf32>
    %101 = vector.broadcast %73 : vector<1x32xf32> to vector<8x32xf32>
    %102 = arith.mulf %100, %101 : vector<8x32xf32>
    %103 = vector.broadcast %74 : vector<1x32xf32> to vector<8x32xf32>
    %104 = arith.addf %102, %103 : vector<8x32xf32>
    %cst_39 = arith.constant 0.000000e+00 : f32
    %105 = vector.broadcast %cst_39 : f32 to vector<8x32xf32>
    %106 = arith.maximumf %104, %105 : vector<8x32xf32>
    %107 = vector.broadcast %1 : vector<8x1xf32> to vector<8x32xf32>
    %108 = arith.mulf %106, %107 : vector<8x32xf32>
    %cst_40 = arith.constant dense<0.000000e+00> : vector<32xf32>
    %109 = vector.multi_reduction <add>, %108, %cst_40 [0] : vector<8x32xf32> to vector<32xf32>
    %110 = vector.shape_cast %109 : vector<32xf32> to vector<1x32xf32>
    %111 = vector.broadcast %6 : vector<1x1xf32> to vector<1x32xf32>
    %112 = arith.mulf %110, %111 : vector<1x32xf32>
    %c0_41 = arith.constant 0 : index
    %c0_42 = arith.constant 0 : index
    %113 = vector.load %arg14[%c0_41, %c0_42] : memref<32x16xf32, #tpu.memory_space<vmem>>, vector<32x16xf32>
    %cst_43 = arith.constant dense<0.000000e+00> : vector<1x16xf32>
    %114 = tpu.matmul %112, %113, %cst_43 {dimension_numbers = #tpu.dot_dimension_numbers<[1], [0], [0], [1], [0, 0, 1, 1], [], []>} : vector<1x32xf32>, vector<32x16xf32>, vector<1x16xf32> -> vector<1x16xf32>
    %c0_44 = arith.constant 0 : index
    %c0_45 = arith.constant 0 : index
    %115 = vector.load %arg15[%c0_44, %c0_45] : memref<1x16xf32, #tpu.memory_space<vmem>>, vector<1x16xf32>
    %116 = arith.addf %114, %115 : vector<1x16xf32>
    %c0_46 = arith.constant 0 : index
    %c0_47 = arith.constant 0 : index
    %117 = vector.load %arg16[%c0_46, %c0_47] : memref<32x16xf32, #tpu.memory_space<vmem>>, vector<32x16xf32>
    %cst_48 = arith.constant dense<0.000000e+00> : vector<1x16xf32>
    %118 = tpu.matmul %112, %117, %cst_48 {dimension_numbers = #tpu.dot_dimension_numbers<[1], [0], [0], [1], [0, 0, 1, 1], [], []>} : vector<1x32xf32>, vector<32x16xf32>, vector<1x16xf32> -> vector<1x16xf32>
    %c0_49 = arith.constant 0 : index
    %c0_50 = arith.constant 0 : index
    %119 = vector.load %arg17[%c0_49, %c0_50] : memref<1x16xf32, #tpu.memory_space<vmem>>, vector<1x16xf32>
    %120 = arith.addf %118, %119 : vector<1x16xf32>
    %cst_51 = arith.constant -4.000000e+00 : f32
    %cst_52 = arith.constant 4.000000e+00 : f32
    %121 = vector.broadcast %cst_51 : f32 to vector<1x16xf32>
    %122 = arith.maximumf %121, %120 : vector<1x16xf32>
    %123 = vector.broadcast %cst_52 : f32 to vector<1x16xf32>
    %124 = arith.minimumf %123, %122 : vector<1x16xf32>
    %c0_53 = arith.constant 0 : index
    %c0_54 = arith.constant 0 : index
    %125 = vector.load %arg5[%c0_53, %c0_54] : memref<1x16xf32, #tpu.memory_space<vmem>>, vector<1x16xf32>
    %cst_55 = arith.constant 5.000000e-01 : f32
    %126 = vector.broadcast %cst_55 : f32 to vector<1x16xf32>
    %127 = arith.mulf %126, %124 : vector<1x16xf32>
    %128 = math.exp %127 : vector<1x16xf32>
    %129 = arith.mulf %125, %128 : vector<1x16xf32>
    %130 = arith.addf %116, %129 : vector<1x16xf32>
    %c0_56 = arith.constant 0 : index
    %c0_57 = arith.constant 0 : index
    %131 = vector.load %arg18[%c0_56, %c0_57] : memref<16x64xf32, #tpu.memory_space<vmem>>, vector<16x64xf32>
    %cst_58 = arith.constant dense<0.000000e+00> : vector<1x64xf32>
    %132 = tpu.matmul %130, %131, %cst_58 {dimension_numbers = #tpu.dot_dimension_numbers<[1], [0], [0], [1], [0, 0, 1, 1], [], []>} : vector<1x16xf32>, vector<16x64xf32>, vector<1x64xf32> -> vector<1x64xf32>
    %c0_59 = arith.constant 0 : index
    %c0_60 = arith.constant 0 : index
    %133 = vector.load %arg19[%c0_59, %c0_60] : memref<1x64xf32, #tpu.memory_space<vmem>>, vector<1x64xf32>
    %134 = arith.addf %132, %133 : vector<1x64xf32>
    %cst_61 = arith.constant 0.000000e+00 : f32
    %135 = vector.broadcast %cst_61 : f32 to vector<1x64xf32>
    %136 = arith.maximumf %134, %135 : vector<1x64xf32>
    %c0_62 = arith.constant 0 : index
    %c0_63 = arith.constant 0 : index
    %137 = vector.load %arg20[%c0_62, %c0_63] : memref<64x64xf32, #tpu.memory_space<vmem>>, vector<64x64xf32>
    %cst_64 = arith.constant dense<0.000000e+00> : vector<1x64xf32>
    %138 = tpu.matmul %136, %137, %cst_64 {dimension_numbers = #tpu.dot_dimension_numbers<[1], [0], [0], [1], [0, 0, 1, 1], [], []>} : vector<1x64xf32>, vector<64x64xf32>, vector<1x64xf32> -> vector<1x64xf32>
    %c0_65 = arith.constant 0 : index
    %c0_66 = arith.constant 0 : index
    %139 = vector.load %arg21[%c0_65, %c0_66] : memref<1x64xf32, #tpu.memory_space<vmem>>, vector<1x64xf32>
    %140 = arith.addf %138, %139 : vector<1x64xf32>
    %c0_67 = arith.constant 0 : index
    %c0_68 = arith.constant 0 : index
    %141 = vector.load %arg22[%c0_67, %c0_68] : memref<8x64xf32, #tpu.memory_space<vmem>>, vector<8x64xf32>
    %142 = vector.broadcast %140 : vector<1x64xf32> to vector<8x64xf32>
    %143 = arith.mulf %142, %141 : vector<8x64xf32>
    %c0_69 = arith.constant 0 : index
    %c0_70 = arith.constant 0 : index
    %144 = vector.load %arg23[%c0_69, %c0_70] : memref<64x8xf32, #tpu.memory_space<vmem>>, vector<64x8xf32>
    %cst_71 = arith.constant dense<0.000000e+00> : vector<8x8xf32>
    %145 = tpu.matmul %143, %144, %cst_71 {dimension_numbers = #tpu.dot_dimension_numbers<[1], [0], [0], [1], [0, 0, 1, 1], [], []>} : vector<8x64xf32>, vector<64x8xf32>, vector<8x8xf32> -> vector<8x8xf32>
    %cst_72 = arith.constant 1.000000e+00 : f32
    %146 = vector.broadcast %cst_72 : f32 to vector<8x8xf32>
    %147 = arith.subf %146, %11 : vector<8x8xf32>
    %148 = arith.mulf %5, %147 : vector<8x8xf32>
    %149 = arith.mulf %0, %148 : vector<8x8xf32>
    %cst_73 = arith.constant 0.000000e+00 : f32
    %150 = vector.broadcast %cst_73 : f32 to vector<8x8xf32>
    %151 = arith.subf %150, %145 : vector<8x8xf32>
    %152 = math.exp %151 : vector<8x8xf32>
    %cst_74 = arith.constant 1.000000e+00 : f32
    %153 = vector.broadcast %cst_74 : f32 to vector<8x8xf32>
    %154 = arith.addf %153, %152 : vector<8x8xf32>
    %cst_75 = arith.constant 1.000000e+00 : f32
    %155 = vector.broadcast %cst_75 : f32 to vector<8x8xf32>
    %156 = arith.divf %155, %154 : vector<8x8xf32>
    %157 = arith.mulf %156, %148 : vector<8x8xf32>
    %cst_76 = arith.constant dense<0.000000e+00> : vector<8xf32>
    %158 = vector.multi_reduction <add>, %149, %cst_76 [1] : vector<8x8xf32> to vector<8xf32>
    %159 = vector.shape_cast %158 : vector<8xf32> to vector<8x1xf32>
    %cst_77 = arith.constant 1.000000e+00 : f32
    %160 = vector.broadcast %cst_77 : f32 to vector<8x1xf32>
    %161 = arith.addf %160, %159 : vector<8x1xf32>
    %cst_78 = arith.constant dense<0.000000e+00> : vector<8xf32>
    %162 = vector.multi_reduction <add>, %157, %cst_78 [0] : vector<8x8xf32> to vector<8xf32>
    %163 = vector.shape_cast %162 : vector<8xf32> to vector<1x8xf32>
    %cst_79 = arith.constant 1.000000e+00 : f32
    %164 = vector.broadcast %cst_79 : f32 to vector<1x8xf32>
    %165 = arith.addf %164, %163 : vector<1x8xf32>
    %166 = vector.broadcast %161 : vector<8x1xf32> to vector<8x8xf32>
    %167 = vector.broadcast %165 : vector<1x8xf32> to vector<8x8xf32>
    %168 = arith.subf %166, %167 : vector<8x8xf32>
    %169 = math.absf %168 : vector<8x8xf32>
    %cst_80 = arith.constant 1.000000e+00 : f32
    %170 = vector.broadcast %cst_80 : f32 to vector<8x8xf32>
    %171 = arith.addf %169, %170 : vector<8x8xf32>
    %172 = arith.divf %5, %171 : vector<8x8xf32>
    %173 = vector.broadcast %6 : vector<1x1xf32> to vector<8x8xf32>
    %174 = arith.mulf %5, %173 : vector<8x8xf32>
    %175 = vector.extract_strided_slice %157 {offsets = [0, 0], sizes = [1, 8], strides = [1, 1]} : vector<8x8xf32> to vector<1x8xf32>
    %176 = vector.extract_strided_slice %157 {offsets = [1, 0], sizes = [1, 8], strides = [1, 1]} : vector<8x8xf32> to vector<1x8xf32>
    %177 = vector.extract_strided_slice %157 {offsets = [2, 0], sizes = [1, 8], strides = [1, 1]} : vector<8x8xf32> to vector<1x8xf32>
    %178 = vector.extract_strided_slice %157 {offsets = [3, 0], sizes = [1, 8], strides = [1, 1]} : vector<8x8xf32> to vector<1x8xf32>
    %179 = vector.extract_strided_slice %157 {offsets = [4, 0], sizes = [1, 8], strides = [1, 1]} : vector<8x8xf32> to vector<1x8xf32>
    %180 = vector.extract_strided_slice %157 {offsets = [5, 0], sizes = [1, 8], strides = [1, 1]} : vector<8x8xf32> to vector<1x8xf32>
    %181 = vector.extract_strided_slice %157 {offsets = [6, 0], sizes = [1, 8], strides = [1, 1]} : vector<8x8xf32> to vector<1x8xf32>
    %182 = vector.extract_strided_slice %157 {offsets = [7, 0], sizes = [1, 8], strides = [1, 1]} : vector<8x8xf32> to vector<1x8xf32>
    %183 = tpu.iota {dimensions = array<i32: 1>} : vector<1x8xi32>
    %c0_i32 = arith.constant 0 : i32
    %184 = vector.broadcast %c0_i32 : i32 to vector<1x8xi32>
    %185 = arith.cmpi eq, %183, %184 : vector<1x8xi32>
    %186 = arith.extui %185 : vector<1x8xi1> to vector<1x8xi32>
    %187 = arith.sitofp %186 : vector<1x8xi32> to vector<1x8xf32>
    %c1_i32 = arith.constant 1 : i32
    %188 = vector.broadcast %c1_i32 : i32 to vector<1x8xi32>
    %189 = arith.cmpi eq, %183, %188 : vector<1x8xi32>
    %190 = arith.extui %189 : vector<1x8xi1> to vector<1x8xi32>
    %191 = arith.sitofp %190 : vector<1x8xi32> to vector<1x8xf32>
    %c2_i32 = arith.constant 2 : i32
    %192 = vector.broadcast %c2_i32 : i32 to vector<1x8xi32>
    %193 = arith.cmpi eq, %183, %192 : vector<1x8xi32>
    %194 = arith.extui %193 : vector<1x8xi1> to vector<1x8xi32>
    %195 = arith.sitofp %194 : vector<1x8xi32> to vector<1x8xf32>
    %c3_i32 = arith.constant 3 : i32
    %196 = vector.broadcast %c3_i32 : i32 to vector<1x8xi32>
    %197 = arith.cmpi eq, %183, %196 : vector<1x8xi32>
    %198 = arith.extui %197 : vector<1x8xi1> to vector<1x8xi32>
    %199 = arith.sitofp %198 : vector<1x8xi32> to vector<1x8xf32>
    %c4_i32 = arith.constant 4 : i32
    %200 = vector.broadcast %c4_i32 : i32 to vector<1x8xi32>
    %201 = arith.cmpi eq, %183, %200 : vector<1x8xi32>
    %202 = arith.extui %201 : vector<1x8xi1> to vector<1x8xi32>
    %203 = arith.sitofp %202 : vector<1x8xi32> to vector<1x8xf32>
    %c5_i32 = arith.constant 5 : i32
    %204 = vector.broadcast %c5_i32 : i32 to vector<1x8xi32>
    %205 = arith.cmpi eq, %183, %204 : vector<1x8xi32>
    %206 = arith.extui %205 : vector<1x8xi1> to vector<1x8xi32>
    %207 = arith.sitofp %206 : vector<1x8xi32> to vector<1x8xf32>
    %c6_i32 = arith.constant 6 : i32
    %208 = vector.broadcast %c6_i32 : i32 to vector<1x8xi32>
    %209 = arith.cmpi eq, %183, %208 : vector<1x8xi32>
    %210 = arith.extui %209 : vector<1x8xi1> to vector<1x8xi32>
    %211 = arith.sitofp %210 : vector<1x8xi32> to vector<1x8xf32>
    %c7_i32 = arith.constant 7 : i32
    %212 = vector.broadcast %c7_i32 : i32 to vector<1x8xi32>
    %213 = arith.cmpi eq, %183, %212 : vector<1x8xi32>
    %214 = arith.extui %213 : vector<1x8xi1> to vector<1x8xi32>
    %215 = arith.sitofp %214 : vector<1x8xi32> to vector<1x8xf32>
    %cst_81 = arith.constant 0.000000e+00 : f32
    %c0_i32_82 = arith.constant 0 : i32
    %c50_i32 = arith.constant 50 : i32
    %216 = arith.addi %c0_i32_82, %c50_i32 : i32
    %c1_i32_83 = arith.constant 1 : i32
    %217:2 = scf.for %arg26 = %c0_i32_82 to %216 step %c1_i32_83 iter_args(%arg27 = %174, %arg28 = %cst_81) -> (vector<8x8xf32>, f32)  : i32 {
      %cst_92 = arith.constant 0.000000e+00 : f32
      %248 = vector.broadcast %cst_92 : f32 to vector<8x8xf32>
      %249 = vector.broadcast %175 : vector<1x8xf32> to vector<8x8xf32>
      %250 = arith.mulf %249, %arg27 : vector<8x8xf32>
      %cst_93 = arith.constant dense<0xFF800000> : vector<8xf32>
      %251 = vector.multi_reduction <maximumf>, %250, %cst_93 [1] : vector<8x8xf32> to vector<8xf32>
      %252 = vector.shape_cast %251 : vector<8xf32> to vector<8x1xf32>
      %253 = vector.broadcast %252 : vector<8x1xf32> to vector<8x8xf32>
      %254 = vector.broadcast %187 : vector<1x8xf32> to vector<8x8xf32>
      %255 = arith.mulf %253, %254 : vector<8x8xf32>
      %256 = arith.addf %248, %255 : vector<8x8xf32>
      %257 = vector.broadcast %176 : vector<1x8xf32> to vector<8x8xf32>
      %258 = arith.mulf %257, %arg27 : vector<8x8xf32>
      %cst_94 = arith.constant dense<0xFF800000> : vector<8xf32>
      %259 = vector.multi_reduction <maximumf>, %258, %cst_94 [1] : vector<8x8xf32> to vector<8xf32>
      %260 = vector.shape_cast %259 : vector<8xf32> to vector<8x1xf32>
      %261 = vector.broadcast %260 : vector<8x1xf32> to vector<8x8xf32>
      %262 = vector.broadcast %191 : vector<1x8xf32> to vector<8x8xf32>
      %263 = arith.mulf %261, %262 : vector<8x8xf32>
      %264 = arith.addf %256, %263 : vector<8x8xf32>
      %265 = vector.broadcast %177 : vector<1x8xf32> to vector<8x8xf32>
      %266 = arith.mulf %265, %arg27 : vector<8x8xf32>
      %cst_95 = arith.constant dense<0xFF800000> : vector<8xf32>
      %267 = vector.multi_reduction <maximumf>, %266, %cst_95 [1] : vector<8x8xf32> to vector<8xf32>
      %268 = vector.shape_cast %267 : vector<8xf32> to vector<8x1xf32>
      %269 = vector.broadcast %268 : vector<8x1xf32> to vector<8x8xf32>
      %270 = vector.broadcast %195 : vector<1x8xf32> to vector<8x8xf32>
      %271 = arith.mulf %269, %270 : vector<8x8xf32>
      %272 = arith.addf %264, %271 : vector<8x8xf32>
      %273 = vector.broadcast %178 : vector<1x8xf32> to vector<8x8xf32>
      %274 = arith.mulf %273, %arg27 : vector<8x8xf32>
      %cst_96 = arith.constant dense<0xFF800000> : vector<8xf32>
      %275 = vector.multi_reduction <maximumf>, %274, %cst_96 [1] : vector<8x8xf32> to vector<8xf32>
      %276 = vector.shape_cast %275 : vector<8xf32> to vector<8x1xf32>
      %277 = vector.broadcast %276 : vector<8x1xf32> to vector<8x8xf32>
      %278 = vector.broadcast %199 : vector<1x8xf32> to vector<8x8xf32>
      %279 = arith.mulf %277, %278 : vector<8x8xf32>
      %280 = arith.addf %272, %279 : vector<8x8xf32>
      %281 = vector.broadcast %179 : vector<1x8xf32> to vector<8x8xf32>
      %282 = arith.mulf %281, %arg27 : vector<8x8xf32>
      %cst_97 = arith.constant dense<0xFF800000> : vector<8xf32>
      %283 = vector.multi_reduction <maximumf>, %282, %cst_97 [1] : vector<8x8xf32> to vector<8xf32>
      %284 = vector.shape_cast %283 : vector<8xf32> to vector<8x1xf32>
      %285 = vector.broadcast %284 : vector<8x1xf32> to vector<8x8xf32>
      %286 = vector.broadcast %203 : vector<1x8xf32> to vector<8x8xf32>
      %287 = arith.mulf %285, %286 : vector<8x8xf32>
      %288 = arith.addf %280, %287 : vector<8x8xf32>
      %289 = vector.broadcast %180 : vector<1x8xf32> to vector<8x8xf32>
      %290 = arith.mulf %289, %arg27 : vector<8x8xf32>
      %cst_98 = arith.constant dense<0xFF800000> : vector<8xf32>
      %291 = vector.multi_reduction <maximumf>, %290, %cst_98 [1] : vector<8x8xf32> to vector<8xf32>
      %292 = vector.shape_cast %291 : vector<8xf32> to vector<8x1xf32>
      %293 = vector.broadcast %292 : vector<8x1xf32> to vector<8x8xf32>
      %294 = vector.broadcast %207 : vector<1x8xf32> to vector<8x8xf32>
      %295 = arith.mulf %293, %294 : vector<8x8xf32>
      %296 = arith.addf %288, %295 : vector<8x8xf32>
      %297 = vector.broadcast %181 : vector<1x8xf32> to vector<8x8xf32>
      %298 = arith.mulf %297, %arg27 : vector<8x8xf32>
      %cst_99 = arith.constant dense<0xFF800000> : vector<8xf32>
      %299 = vector.multi_reduction <maximumf>, %298, %cst_99 [1] : vector<8x8xf32> to vector<8xf32>
      %300 = vector.shape_cast %299 : vector<8xf32> to vector<8x1xf32>
      %301 = vector.broadcast %300 : vector<8x1xf32> to vector<8x8xf32>
      %302 = vector.broadcast %211 : vector<1x8xf32> to vector<8x8xf32>
      %303 = arith.mulf %301, %302 : vector<8x8xf32>
      %304 = arith.addf %296, %303 : vector<8x8xf32>
      %305 = vector.broadcast %182 : vector<1x8xf32> to vector<8x8xf32>
      %306 = arith.mulf %305, %arg27 : vector<8x8xf32>
      %cst_100 = arith.constant dense<0xFF800000> : vector<8xf32>
      %307 = vector.multi_reduction <maximumf>, %306, %cst_100 [1] : vector<8x8xf32> to vector<8xf32>
      %308 = vector.shape_cast %307 : vector<8xf32> to vector<8x1xf32>
      %309 = vector.broadcast %308 : vector<8x1xf32> to vector<8x8xf32>
      %310 = vector.broadcast %215 : vector<1x8xf32> to vector<8x8xf32>
      %311 = arith.mulf %309, %310 : vector<8x8xf32>
      %312 = arith.addf %304, %311 : vector<8x8xf32>
      %cst_101 = arith.constant dense<0.000000e+00> : vector<8x8xf32>
      %313 = tpu.matmul %149, %312, %cst_101 {dimension_numbers = #tpu.dot_dimension_numbers<[1], [0], [0], [1], [0, 0, 1, 1], [], []>} : vector<8x8xf32>, vector<8x8xf32>, vector<8x8xf32> -> vector<8x8xf32>
      %314 = arith.mulf %arg27, %172 : vector<8x8xf32>
      %315 = arith.addf %314, %313 : vector<8x8xf32>
      %316 = arith.mulf %315, %315 : vector<8x8xf32>
      %317 = vector.shape_cast %316 : vector<8x8xf32> to vector<1x8x8xf32>
      %cst_102 = arith.constant dense<0.000000e+00> : vector<1xf32>
      %318 = vector.multi_reduction <add>, %317, %cst_102 [1, 2] : vector<1x8x8xf32> to vector<1xf32>
      %319 = vector.shape_cast %318 : vector<1xf32> to vector<1x1x1xf32>
      %320 = vector.extract %319[0, 0, 0] : f32 from vector<1x1x1xf32>
      %cst_103 = arith.constant 9.99999968E-21 : f32
      %321 = arith.addf %320, %cst_103 : f32
      %322 = math.rsqrt %321 : f32
      %323 = vector.broadcast %322 : f32 to vector<8x8xf32>
      %324 = arith.mulf %315, %323 : vector<8x8xf32>
      %325 = arith.subf %324, %arg27 : vector<8x8xf32>
      %326 = math.absf %325 : vector<8x8xf32>
      %327 = vector.shape_cast %326 : vector<8x8xf32> to vector<1x8x8xf32>
      %cst_104 = arith.constant dense<0xFF800000> : vector<1xf32>
      %328 = vector.multi_reduction <maximumf>, %327, %cst_104 [1, 2] : vector<1x8x8xf32> to vector<1xf32>
      %329 = vector.shape_cast %328 : vector<1xf32> to vector<1x1x1xf32>
      %330 = vector.extract %329[0, 0, 0] : f32 from vector<1x1x1xf32>
      %331 = vector.broadcast %arg28 : f32 to vector<8x8xf32>
      %332 = arith.mulf %arg27, %331 : vector<8x8xf32>
      %cst_105 = arith.constant 1.000000e+00 : f32
      %333 = arith.subf %cst_105, %arg28 : f32
      %334 = vector.broadcast %333 : f32 to vector<8x8xf32>
      %335 = arith.mulf %324, %334 : vector<8x8xf32>
      %336 = arith.addf %332, %335 : vector<8x8xf32>
      %cst_106 = arith.constant 9.99999974E-5 : f32
      %337 = arith.cmpf olt, %330, %cst_106 : f32
      %338 = arith.extui %337 : i1 to i32
      %339 = arith.sitofp %338 : i32 to f32
      %340 = arith.maximumf %arg28, %339 : f32
      scf.yield %336, %340 : vector<8x8xf32>, f32
    }
    %218 = tpu.iota {dimensions = array<i32: 0>} : vector<16x128xi32>
    %219 = tpu.iota {dimensions = array<i32: 1>} : vector<16x128xi32>
    %220 = arith.cmpi eq, %219, %218 : vector<16x128xi32>
    %221 = arith.extui %220 : vector<16x128xi1> to vector<16x128xi32>
    %222 = arith.sitofp %221 : vector<16x128xi32> to vector<16x128xf32>
    %c16_i32 = arith.constant 16 : i32
    %223 = vector.broadcast %c16_i32 : i32 to vector<16x128xi32>
    %224 = arith.addi %218, %223 : vector<16x128xi32>
    %225 = arith.cmpi eq, %219, %224 : vector<16x128xi32>
    %226 = arith.extui %225 : vector<16x128xi1> to vector<16x128xi32>
    %227 = arith.sitofp %226 : vector<16x128xi32> to vector<16x128xf32>
    %228 = tpu.iota {dimensions = array<i32: 0>} : vector<64x128xi32>
    %229 = tpu.iota {dimensions = array<i32: 1>} : vector<64x128xi32>
    %c32_i32 = arith.constant 32 : i32
    %230 = vector.broadcast %c32_i32 : i32 to vector<64x128xi32>
    %231 = arith.addi %228, %230 : vector<64x128xi32>
    %232 = arith.cmpi eq, %229, %231 : vector<64x128xi32>
    %233 = arith.extui %232 : vector<64x128xi1> to vector<64x128xi32>
    %234 = arith.sitofp %233 : vector<64x128xi32> to vector<64x128xf32>
    %cst_84 = arith.constant dense<0.000000e+00> : vector<1x128xf32>
    %235 = tpu.matmul %116, %222, %cst_84 {dimension_numbers = #tpu.dot_dimension_numbers<[1], [0], [0], [1], [0, 0, 1, 1], [], []>} : vector<1x16xf32>, vector<16x128xf32>, vector<1x128xf32> -> vector<1x128xf32>
    %cst_85 = arith.constant dense<0.000000e+00> : vector<1x128xf32>
    %236 = tpu.matmul %124, %227, %cst_85 {dimension_numbers = #tpu.dot_dimension_numbers<[1], [0], [0], [1], [0, 0, 1, 1], [], []>} : vector<1x16xf32>, vector<16x128xf32>, vector<1x128xf32> -> vector<1x128xf32>
    %237 = arith.addf %235, %236 : vector<1x128xf32>
    %cst_86 = arith.constant dense<0.000000e+00> : vector<1x128xf32>
    %238 = tpu.matmul %140, %234, %cst_86 {dimension_numbers = #tpu.dot_dimension_numbers<[1], [0], [0], [1], [0, 0, 1, 1], [], []>} : vector<1x64xf32>, vector<64x128xf32>, vector<1x128xf32> -> vector<1x128xf32>
    %239 = arith.addf %237, %238 : vector<1x128xf32>
    %c0_87 = arith.constant 0 : index
    %c0_88 = arith.constant 0 : index
    %240 = vector.load %arg24[%c0_87, %c0_88] : memref<1x128xf32, #tpu.memory_space<vmem>>, vector<1x128xf32>
    tpu.vector_store %arg24[%c0_87, %c0_88], %239 {strides = array<i32>} : memref<1x128xf32, #tpu.memory_space<vmem>>, vector<1x128xf32>,
    %241 = tpu.iota {dimensions = array<i32: 0>} : vector<8x128xi32>
    %242 = tpu.iota {dimensions = array<i32: 1>} : vector<8x128xi32>
    %243 = arith.cmpi eq, %242, %241 : vector<8x128xi32>
    %244 = arith.extui %243 : vector<8x128xi1> to vector<8x128xi32>
    %245 = arith.sitofp %244 : vector<8x128xi32> to vector<8x128xf32>
    %cst_89 = arith.constant dense<0.000000e+00> : vector<8x128xf32>
    %246 = tpu.matmul %217#0, %245, %cst_89 {dimension_numbers = #tpu.dot_dimension_numbers<[1], [0], [0], [1], [0, 0, 1, 1], [], []>} : vector<8x8xf32>, vector<8x128xf32>, vector<8x128xf32> -> vector<8x128xf32>
    %c0_90 = arith.constant 0 : index
    %c0_91 = arith.constant 0 : index
    %247 = vector.load %arg25[%c0_90, %c0_91] : memref<8x128xf32, #tpu.memory_space<vmem>>, vector<8x128xf32>
    tpu.vector_store %arg25[%c0_90, %c0_91], %246 {strides = array<i32>} : memref<8x128xf32, #tpu.memory_space<vmem>>, vector<8x128xf32>,
    return
  }
}

</mosaic_0001>

<bundles_post_ra>
// kernel: squeeze.5
= control target key start
LH: loop header
LB: loop body
LE: loop exit
PB: predicated region body
PF: predicated region fallthrough
CT: control target
= control target key end

     0   :  { %s66_s8 = smov 104   ;;  %vm7_vm0 = vcmask 64512   ;;  %s67_s11 = smov 112   ;;  %s117_s0 = inlined_call_operand.vmem [shape: f32[64], index: 0, kind: input, shape index: {}]   ;;  %s118_s1 = inlined_call_operand.vmem [shape: f32[8,8], index: 1, kind: output, shape index: {}]  }
   0x1   :  { %v4_v0 = vld [vmem:[%s117_s0] sm:$0x1]  ;;  %s65_s0 = smov 120   ;;  %s68_s12 = smov 96  }
   0x2   :  { %5 = vst [vmem:[#allocation0] sm:$0x1] %v4_v0  ;;  %s69_s13 = smov 88   ;;  %s70_s14 = smov 80  }
   0x3   :  { %s71_s15 = smov 72  }
   0x9   :  { %v9_v1 = vld [vmem:[#allocation0] sm:$0x1]  }
   0xa   :  { %v21_v2 = vld [vmem:[#allocation0] sm:$0x1]   ;;  %10 = vrot.lane.b32.xlu0 %v9_v1, %s65_s0 }
   0xb   :  { %22 = vrot.lane.b32.xlu1 %v21_v2, %s66_s8  ;;  %v15_v3 = vld [vmem:[#allocation0] sm:$0x1]  }
   0xc   :  { %v27_v4 = vld [vmem:[#allocation0] sm:$0x1]  }
   0xd   :  { %v6_v5 = vld [vmem:[#allocation0] sm:$0x1]  }
   0xe   :  { %8 = vst.msk [vmem:[%s118_s1] sm:$0x1] %vm7_vm0, %v6_v5   ;;  %16 = vrot.lane.b32.xlu0 %v15_v3, %s67_s11  ;;  %v33_v6 = vld [vmem:[#allocation0] sm:$0x1]  }
   0xf   :  { %28 = vrot.lane.b32.xlu1 %v27_v4, %s68_s12  ;;  %v39_v7 = vld [vmem:[#allocation0] sm:$0x1]  }
  0x10   :  { %v45_v8 = vld [vmem:[#allocation0] sm:$0x1]  }
  0x12   :  { %34 = vrot.lane.b32.xlu0 %v33_v6, %s69_s13 }
  0x13   :  { %40 = vrot.lane.b32.xlu1 %v39_v7, %s70_s14 }
  0x16   :  { %46 = vrot.lane.b32.xlu0 %v45_v8, %s71_s15 }
  0x7c   :  { %v11_v9 = vpop.permute.xlu0 %10  }
  0x7d   :  { %v23_v10 = vpop.permute.xlu1 %22   ;;  %51 = vst.msk [vmem:[%s118_s1 + $0x1] sm:$0x1] %vm7_vm0, %v11_v9  }
  0x7e   :  { %53 = vst.msk [vmem:[%s118_s1 + $0x3] sm:$0x1] %vm7_vm0, %v23_v10  }
  0x80   :  { %v17_v11 = vpop.permute.xlu0 %16  }
  0x81   :  { %v29_v12 = vpop.permute.xlu1 %28   ;;  %52 = vst.msk [vmem:[%s118_s1 + $0x2] sm:$0x1] %vm7_vm0, %v17_v11  }
  0x82   :  { %54 = vst.msk [vmem:[%s118_s1 + $0x4] sm:$0x1] %vm7_vm0, %v29_v12  }
  0x84   :  { %v35_v13 = vpop.permute.xlu0 %34  }
  0x85   :  { %v41_v14 = vpop.permute.xlu1 %40   ;;  %55 = vst.msk [vmem:[%s118_s1 + $0x5] sm:$0x1] %vm7_vm0, %v35_v13  }
  0x86   :  { %56 = vst.msk [vmem:[%s118_s1 + $0x6] sm:$0x1] %vm7_vm0, %v41_v14  }
  0x88   :  { %v47_v15 = vpop.permute.xlu0 %46  }
  0x89   :  { %57 = vst.msk [vmem:[%s118_s1 + $0x7] sm:$0x1] %vm7_vm0, %v47_v15  }

// kernel: _graphvae_forward_impl.1
= control target key start
LH: loop header
LB: loop body
LE: loop exit
PB: predicated region body
PF: predicated region fallthrough
CT: control target
= control target key end

     0   :  { %s2597_s0 = inlined_call_operand.vmem [shape: f32[8,8], index: 0, kind: input, shape index: {}]   ;;  %s2598_s1 = inlined_call_operand.vmem [shape: f32[8,4], index: 1, kind: input, shape index: {}]   ;;  %s2599_s2 = inlined_call_operand.vmem [shape: f32[8,1], index: 2, kind: input, shape index: {}]   ;;  %s2600_s3 = inlined_call_operand.vmem [shape: f32[1,8], index: 3, kind: input, shape index: {}]   ;;  %s2601_s4 = inlined_call_operand.<no memory space> [shape: f32[1,1], index: 4, kind: input, shape index: {}]   ;;  %s2602_s5 = inlined_call_operand.vmem [shape: f32[1,16], index: 5, kind: input, shape index: {}]   ;;  %s2603_s6 = inlined_call_operand.vmem [shape: f32[4,32], index: 6, kind: input, shape index: {}]   ;;  %s2604_s7 = inlined_call_operand.vmem [shape: f32[1,32], index: 7, kind: input, shape index: {}]   ;;  %s2605_s8 = inlined_call_operand.vmem [shape: f32[1,32], index: 8, kind: input, shape index: {}]   ;;  %s2606_s9 = inlined_call_operand.vmem [shape: f32[1,32], index: 9, kind: input, shape index: {}]   ;;  %s2607_s10 = inlined_call_operand.vmem [shape: f32[32,32], index: 10, kind: input, shape index: {}]   ;;  %s2608_s11 = inlined_call_operand.vmem [shape: f32[1,32], index: 11, kind: input, shape index: {}]   ;;  %s2609_s12 = inlined_call_operand.vmem [shape: f32[1,32], index: 12, kind: input, shape index: {}]   ;;  %s2610_s13 = inlined_call_operand.vmem [shape: f32[1,32], index: 13, kind: input, shape index: {}]   ;;  %s2611_s14 = inlined_call_operand.vmem [shape: f32[32,16], index: 14, kind: input, shape index: {}]   ;;  %s2612_s15 = inlined_call_operand.vmem [shape: f32[1,16], index: 15, kind: input, shape index: {}]   ;;  %s2613_s16 = inlined_call_operand.vmem [shape: f32[32,16], index: 16, kind: input, shape index: {}]   ;;  %s2614_s17 = inlined_call_operand.vmem [shape: f32[1,16], index: 17, kind: input, shape index: {}]   ;;  %s2615_s18 = inlined_call_operand.vmem [shape: f32[16,64], index: 18, kind: input, shape index: {}]   ;;  %s2616_s19 = inlined_call_operand.vmem [shape: f32[1,64], index: 19, kind: input, shape index: {}]   ;;  %s2617_s20 = inlined_call_operand.vmem [shape: f32[64,64], index: 20, kind: input, shape index: {}]   ;;  %s2618_s21 = inlined_call_operand.vmem [shape: f32[1,64], index: 21, kind: input, shape index: {}]   ;;  %s2619_s22 = inlined_call_operand.vmem [shape: f32[8,64], index: 22, kind: input, shape index: {}]   ;;  %s2620_s23 = inlined_call_operand.vmem [shape: f32[64,8], index: 23, kind: input, shape index: {}]   ;;  %s2621_s24 = inlined_call_operand.vmem [shape: f32[1,128], index: 24, kind: output, shape index: {0}]   ;;  %s2622_s25 = inlined_call_operand.hbm [shape: f32[8,128], index: 25, kind: output, shape index: {1}]  }
   0x1   :  { %2623 = sst [smem:[#allocation6_spill]] %s2597_s0 }
   0x2   :  { %2624 = sst [smem:[#allocation7_spill]] %s2598_s1 }
   0x3   :  { %2625 = sst [smem:[#allocation8_spill]] %s2599_s2 }
   0x4   :  { %2626 = sst [smem:[#allocation9_spill]] %s2600_s3 }
   0x5   :  { %2627 = sst [smem:[#allocation10_spill]] %s2601_s4 }
   0x6   :  { %2628 = sst [smem:[#allocation11_spill]] %s2602_s5 }
   0x7   :  { %2629 = sst [smem:[#allocation12_spill]] %s2603_s6  ;;  %s2633_s6 = sld [smem:[#allocation10_spill]] }
   0x8   :  { %2630 = sst [smem:[#allocation13_spill]] %s2604_s7 }
   0x9   :  { %2631 = sst [smem:[#allocation14_spill]] %s2605_s8 }
   0xa   :  { %2632 = sst [smem:[#allocation15_spill]] %s2606_s9 }
   0xd   :  { %v31_v0 = vstv %s2633_s6 }
   0xe   :  { %32 = vst [vmem:[#allocation2] sm:$0x1] %v31_v0 }
   0xf   :  { %s2634_s3 = sld [smem:[#allocation8_spill]]  ;;  %v2024_v2 = vmov 0  }
  0x10   :  { %1956 = vset.pattern.permute.xlu0 %v2024_v2 }
  0x15   :  { %v83_v1 = vld [vmem:[%s2634_s3] sm:$0xff] }
  0x16   :  { %33 = vsyncpa [#allocation4], 0  ;;  %v2025_v3 = vmov 0.0   ;;  %87 = vperm.xlu0 %1956, %v83_v1   ;;  %v91_v4 = vlaneseq  ;;  %1957 = vset.pattern.permute.xlu1 %v2024_v2  ;;  %s2635_s8 = sld [smem:[#allocation12_spill]]  ;;  %vm147_vm8 = vcmask 1043456   ;;  %s2636_s28 = sld [smem:[#allocation7_spill]] }
  0x17   :  { %1715 = vmatprep.subr.mxu0 %v2025_v3  ;;  %1720 = vmatprep.subr.mxu1 %v2025_v3  ;;  %vm143_vm9 = vcmask 31744   ;;  %vm2026_vm10 = vmmov 0   ;;  %s2637_s0 = sld [smem:[#allocation9_spill]]  ;;  %s2638_s6 = sld [smem:[#allocation6_spill]]  ;;  %vm107_vm12 = vcmask 64512   ;;  %v117_v29 = vsub.f32 1.0, %v83_v1 }
  0x18   :  { %v2171_v5 = vand.u32 127, %v91_v4  ;;  %1717 = vmatprep.mubr.msk.f32.mxu0 %vm2026_vm10, %v2025_v3  ;;  %1722 = vmatprep.mubr.msk.f32.mxu1 %vm2026_vm10, %v2025_v3  ;;  %v2217_v16 = vshrl.u32 %v91_v4, 7  ;;  %v97_v27 = vld [vmem:[#allocation2] sm:$0x1]  ;;  %v350_v57 = vld [vmem:[%s2607_s10 + $0x8] sm:$0xff]  ;;  %v2027_v59 = vmov 0.0|0.0  }
  0x19   :  { %v349_v56 = vld [vmem:[%s2607_s10] sm:$0xff]  ;;  %v351_v60 = vld [vmem:[%s2607_s10 + $0x10] sm:$0xff]  ;;  %v352_v61 = vld [vmem:[%s2607_s10 + $0x18] sm:$0xff]  ;;  %s2639_s5 = sld [smem:[#allocation13_spill]]  ;;  %vm301_vm13 = vcmask 261120   ;;  %s2640_s29 = sld [smem:[#allocation14_spill]] }
  0x1a   :  { %vm997_vm0 = vcmp.eq.s32.totalorder %v2171_v5, 0  ;;  %vm1000_vm1 = vcmp.eq.s32.totalorder %v2171_v5, 1  ;;  %vm1003_vm2 = vcmp.eq.s32.totalorder %v2171_v5, 2  ;;  %vm1006_vm3 = vcmp.eq.s32.totalorder %v2171_v5, 3  ;;  %s2641_s30 = sld [smem:[#allocation15_spill]] }
  0x1b   :  { %v2175_v6 = vsel %vm997_vm0, 1.0, %v2025_v3  ;;  %v2181_v7 = vsel %vm1000_vm1, 1.0, %v2025_v3  ;;  %v2184_v8 = vsel %vm1003_vm2, 1.0, %v2025_v3  ;;  %v2187_v9 = vsel %vm1006_vm3, 1.0, %v2025_v3 }
  0x1c   :  { %vm1009_vm4 = vcmp.eq.s32.totalorder %v2171_v5, 4  ;;  %vm1012_vm5 = vcmp.eq.s32.totalorder %v2171_v5, 5  ;;  %vm1015_vm6 = vcmp.eq.s32.totalorder %v2171_v5, 6  ;;  %vm1018_vm7 = vcmp.eq.s32.totalorder %v2171_v5, 7  ;;  %v139_v14 = vld [vmem:[%s2635_s8] sm:$0xf] }
  0x1d   :  { %v2191_v10 = vsel %vm1009_vm4, 1.0, %v2025_v3  ;;  %v2197_v11 = vsel %vm1012_vm5, 1.0, %v2025_v3  ;;  %v2200_v12 = vsel %vm1015_vm6, 1.0, %v2025_v3  ;;  %v2203_v13 = vsel %vm1018_vm7, 1.0, %v2025_v3  ;;  %v138_v15 = vld [vmem:[%s2636_s28] sm:$0xff]  ;;  %1716 = vmatpush3.msk.msra.mxu0 %vm147_vm8, %v139_v14 }
  0x1e   :  { %1718 = vmatmul.mubr.msk.f32.vlgmr.msra.gmra.mrb[0].mxu0 %vm143_vm9, %v138_v15  ;;  %v2220_v17 = vsub.s32 0, %v2217_v16  ;;  %vm102_vm11 = vcmp.eq.s32.totalorder %v2217_v16, %v2171_v5  ;;  %v84_v18 = vld [vmem:[%s2637_s0] sm:$0x1]  ;;  %v1852_v58 = vpack.c.bf16 %v350_v57, %v349_v56  ;;  %1851 = vmatprep.subr.bf16.mxu0 %v2027_v59  ;;  %v1855_v62 = vpack.c.bf16 %v352_v61, %v351_v60  ;;  %v555_v60 = vld [vmem:[%s2611_s14 + $0x18] sm:$0xff] }
  0x1f   :  { %1733 = vmatprep.mubr.msk.f32.mxu0 %vm2026_vm10, %v2025_v3  ;;  %v82_v19 = vld [vmem:[%s2638_s6] sm:$0xff]  ;;  %v1598_v20 = vsel %vm102_vm11, 1.0, %v2025_v3  ;;  %v121_v47 = vsub.f32 1.0, %v84_v18  ;;  %vm716_vm14 = vcmask 130048   ;;  %vm800_vm15 = vcmask 523264  }
  0x20   :  { %v94_v21 = vrot.slane %v84_v18, %v2220_v17  ;;  %v105_v22 = vadd.f32 %v1598_v20, %v82_v19  ;;  %v991_v28 = vrot.slane %v97_v27, %v2220_v17  ;;  %v961_v38 = vsub.f32 1.0, %v1598_v20  ;;  %1853 = vmatpush3.bf16.msra.mxu0 %v1852_v58  ;;  %v1601_v63 = vld [vmem:[%s2639_s5] ss:$0 sm:$0xff]  ;;  %v554_v58 = vld [vmem:[%s2611_s14 + $0x10] sm:$0xff] }
  0x21   :  { %1854 = vmatprep.subr.bf16.mxu0 %v2027_v59  ;;  %v630_v56 = vld [vmem:[%s2613_s16] sm:$0xff] }
  0x24   :  { %1856 = vmatpush3.bf16.msra.mxu0 %v1855_v62  ;;  %v632_v62 = vld [vmem:[%s2613_s16 + $0x10] sm:$0xff] }
  0x25   :  { %1863 = vmatprep.subr.bf16.mxu0 %v2027_v59 }
  0x95   :  { %v2232_v23 = vpop.permute.xlu0 %87 }
  0x96   :  { %v2235_v24 = vmul.f32 %v94_v21, %v2232_v23 }
  0x98   :  { %v106_v25 = vmul.f32 %v105_v22, %v2235_v24  ;;  %v2245_v39 = vmul.f32 %v961_v38, %v2235_v24 }
  0x9a   :  { %v108_v26 = vsel %vm107_vm12, %v106_v25, 0.0  ;;  %v2248_v40 = vmul.f32 %v2245_v39, %v82_v19 }
  0x9b   :  { %109 = vadd.xlane.f32.xlu0 %v108_v26  ;;  %v111_v42 = vrot.slane %v108_v26, 4 }
  0x9c   :  { %v971_v41 = vsel %vm107_vm12, %v2248_v40, 0.0 }
  0x9d   :  { %v112_v43 = vadd.f32 %v111_v42, %v108_v26 }
  0x9f   :  { %v113_v44 = vrot.slane %v112_v43, 2 }
  0xa1   :  { %v114_v45 = vadd.f32 %v113_v44, %v112_v43  ;;  %v1603_v44 = vld [vmem:[%s2640_s29] ss:$0 sm:$0xff] }
  0xa3   :  { %v115_v46 = vrot.slane %v114_v45, 1 }
  0xa5   :  { %v116_v48 = vadd.f32 %v115_v46, %v114_v45  ;;  %v1604_v46 = vld [vmem:[%s2641_s30] ss:$0 sm:$0xff] }
  0xa7   :  { %v122_v49 = vadd.f32 %v121_v47, %v116_v48 }
  0xb1   :  { %993 = vperm.xlu0 %1956, %v991_v28  }
  0xf1   :  { %v217_v36 = vpop.f32.mrb[0].mxu0 }
  0xf2   :  { %v1719_v37 = vpop.f32.mrb[1].mxu0  ;;  %1721 = vmatpush3.msra.mxu1 %v217_v36 }
  0xf3   :  { %1736 = vmatprep.subr.mxu1 %v2025_v3 }
 0x128   :  { %v110_v30 = vpop.xlane.xlu0 %109 }
 0x129   :  { %v118_v31 = vadd.f32 %v117_v29, %v110_v30 }
 0x12b   :  { %1958 = vrsqrt.f32 %v118_v31 }
 0x12c   :  { %1960 = vrsqrt.f32 %v122_v49 }
 0x130   :  { %v994_v32 = vpop.permute.xlu0 %993 }
 0x131   :  { %v2241_v33 = vmul.f32 %v994_v32, %v2235_v24  }
 0x135   :  { %v1959_v34 = vpop.eup %1958 }
 0x136   :  { %v120_v35 = vmul.f32 %v1959_v34, %v83_v1  ;;  %v1961_v50 = vpop.eup %1960 }
 0x137   :  { %v124_v51 = vmul.f32 %v1961_v50, %v84_v18 }
 0x138   :  { %127 = vperm.xlu1 %1957, %v120_v35  }
 0x139   :  { %v135_v54 = vrot.slane %v124_v51, %v2220_v17 }
 0x13c   :  { %311 = vperm.xlu1 %1957, %v97_v27  }
 0x160   :  { %972 = vadd.xlane.f32.xlu1 %v971_v41 }
 0x1b7   :  { %v128_v52 = vpop.permute.xlu1 %127 }
 0x1b8   :  { %v130_v53 = vmul.f32 %v128_v52, %v106_v25 }
 0x1ba   :  { %v137_v55 = vmul.f32 %v135_v54, %v130_v53  ;;  %v552_v53 = vld [vmem:[%s2611_s14] sm:$0xff]  ;;  %v553_v54 = vld [vmem:[%s2611_s14 + $0x8] sm:$0xff] }
 0x1bb   :  { %v312_v21 = vpop.permute.xlu1 %311  ;;  %v1858_v57 = vpack.c.bf16 %v553_v54, %v552_v53 }
 0x1bc   :  { %1723 = vmatmul.mubr.msk.f32.vlgmr.msra.gmra.mrb[0].mxu1 %vm107_vm12, %v137_v55  ;;  %v2277_v25 = vrot.slane %v312_v21, %v2220_v17 }
 0x1bd   :  { %1738 = vmatprep.mubr.msk.f32.mxu1 %vm2026_vm10, %v2025_v3 }
 0x28f   :  { %v296_v0 = vpop.f32.mrb[0].mxu1 }
 0x290   :  { %v297_v1 = vadd.f32 %v1601_v63, %v296_v0  ;;  %v1724_v2 = vpop.f32.mrb[1].mxu1  ;;  %v633_v63 = vld [vmem:[%s2613_s16 + $0x18] sm:$0xff]  ;;  %v1861_v0 = vpack.c.bf16 %v555_v60, %v554_v58 }
 0x291   :  { %v1606_v2 = vld [vmem:[%s2608_s11] ss:$0 sm:$0xff] }
 0x292   :  { %v300_v4 = vmul.f32 %v297_v1, %v2232_v23 }
 0x294   :  { %v302_v14 = vsel %vm301_vm13, %v300_v4, 0.0 }
 0x295   :  { %v303_v15 = vrot.slane %v302_v14, 4 }
 0x297   :  { %v304_v18 = vadd.f32 %v303_v15, %v302_v14 }
 0x299   :  { %v305_v19 = vrot.slane %v304_v18, 2 }
 0x29b   :  { %v306_v20 = vadd.f32 %v305_v19, %v304_v18 }
 0x29d   :  { %v307_v22 = vrot.slane %v306_v20, 1 }
 0x29f   :  { %v308_v26 = vadd.f32 %v307_v22, %v306_v20 }
 0x2a1   :  { %v318_v27 = vmul.f32 %v2277_v25, %v308_v26 }
 0x2a3   :  { %v319_v28 = vsub.f32 %v297_v1, %v318_v27  ;;  %v1867_v1 = vpack.c.bf16 %v633_v63, %v632_v62  ;;  %v714_v62 = vld [vmem:[%s2615_s18 + $0x8] sm:$0xff] }
 0x2a5   :  { %v320_v29 = vmul.f32 %v319_v28, %v2232_v23 }
 0x2a7   :  { %v321_v30 = vmul.f32 %v320_v29, %v320_v29 }
 0x2a9   :  { %v322_v31 = vsel %vm301_vm13, %v321_v30, 0.0 }
 0x2aa   :  { %v323_v32 = vrot.slane %v322_v31, 4 }
 0x2ac   :  { %v324_v34 = vadd.f32 %v323_v32, %v322_v31 }
 0x2ae   :  { %v325_v35 = vrot.slane %v324_v34, 2 }
 0x2b0   :  { %v326_v36 = vadd.f32 %v325_v35, %v324_v34 }
 0x2b2   :  { %v327_v37 = vrot.slane %v326_v36, 1 }
 0x2b4   :  { %v328_v38 = vadd.f32 %v327_v37, %v326_v36 }
 0x2b6   :  { %v329_v41 = vmul.f32 %v328_v38, %v2277_v25 }
 0x2b8   :  { %v330_v42 = vadd.f32 1e-05, %v329_v41 }
 0x2ba   :  { %1962 = vrsqrt.f32 %v330_v42 }
 0x2c4   :  { %v1963_v43 = vpop.eup %1962 }
 0x2c5   :  { %v332_v45 = vmul.f32 %v1963_v43, %v319_v28 }
 0x2c7   :  { %v339_v47 = vmul.f32 %v1603_v44, %v332_v45 }
 0x2c9   :  { %v346_v48 = vadd.f32 %v1604_v46, %v339_v47  ;;  %v1608_v46 = vld [vmem:[%s2609_s12] ss:$0 sm:$0xff] }
 0x2cb   :  { %v347_v49 = vmax.f32 %v346_v48, 0.0  ;;  %v1609_v48 = vld [vmem:[%s2610_s13] ss:$0 sm:$0xff] }
 0x2cd   :  { %v348_v50 = vmul.f32 %v347_v49, %v2232_v23 }
 0x2cf   :  { %1734 = vmatmul.mubr.msk.f32.vlgmr.msra.gmra.mrb[2].mxu0 %vm301_vm13, %v348_v50 }
 0x2d0   :  { %1760 = vmatprep.mubr.msk.f32.mxu0 %vm2026_vm10, %v2025_v3 }
 0x3a2   :  { %v425_v51 = vpop.f32.mrb[2].mxu0 }
 0x3a3   :  { %v1735_v52 = vpop.f32.mrb[3].mxu0  ;;  %1737 = vmatpush3.msra.mxu1 %v425_v51 }
 0x3a4   :  { %1739 = vmatmul.mubr.msk.f32.vlgmr.msra.gmra.mrb[2].mxu1 %vm107_vm12, %v137_v55  ;;  %1857 = vmatprep.subr.bf16.mxu1 %v2027_v59  ;;  %v631_v55 = vld [vmem:[%s2613_s16 + $0x8] sm:$0xff] }
 0x3a5   :  { %1749 = vmatprep.mubr.msk.f32.mxu1 %vm2026_vm10, %v2025_v3  ;;  %v1864_v61 = vpack.c.bf16 %v631_v55, %v630_v56  ;;  %1859 = vmatpush3.bf16.msra.mxu1 %v1858_v57 }
 0x3a6   :  { %1860 = vmatprep.subr.bf16.mxu1 %v2027_v59 }
 0x3a7   :  { %1865 = vmatpush3.bf16.msra.mxu0 %v1864_v61 }
 0x3a8   :  { %1866 = vmatprep.subr.bf16.mxu0 %v2027_v59 }
 0x3a9   :  { %1862 = vmatpush3.bf16.msra.mxu1 %v1861_v0  ;;  %v792_v0 = vld [vmem:[%s2617_s20 + $0x8] sm:$0xff] }
 0x3aa   :  { %1869 = vmatprep.subr.bf16.mxu1 %v2027_v59 }
 0x3ab   :  { %1868 = vmatpush3.bf16.msra.mxu0 %v1867_v1  ;;  %v793_v1 = vld [vmem:[%s2617_s20 + $0x10] sm:$0xff] }
 0x3ac   :  { %1872 = vmatprep.subr.bf16.mxu0 %v2027_v59 }
 0x477   :  { %v501_v4 = vpop.f32.mrb[2].mxu1 }
 0x478   :  { %v502_v14 = vadd.f32 %v1606_v2, %v501_v4  ;;  %v1740_v15 = vpop.f32.mrb[3].mxu1  ;;  %v794_v4 = vld [vmem:[%s2617_s20 + $0x18] sm:$0xff] }
 0x479   :  { %v795_v15 = vld [vmem:[%s2617_s20 + $0x20] sm:$0xff] }
 0x47a   :  { %v505_v18 = vmul.f32 %v502_v14, %v2232_v23 }
 0x47c   :  { %v506_v19 = vsel %vm301_vm13, %v505_v18, 0.0  ;;  %v796_v18 = vld [vmem:[%s2617_s20 + $0x28] sm:$0xff] }
 0x47d   :  { %v507_v20 = vrot.slane %v506_v19, 4 }
 0x47f   :  { %v508_v21 = vadd.f32 %v507_v20, %v506_v19  ;;  %v1879_v19 = vpack.c.bf16 %v796_v18, %v795_v15  ;;  %v634_v20 = vld [vmem:[%s2614_s17] sm:$0x1]  ;;  %s2642_s17 = sld [smem:[#allocation11_spill]] }
 0x481   :  { %v509_v22 = vrot.slane %v508_v21, 2 }
 0x483   :  { %v510_v26 = vadd.f32 %v509_v22, %v508_v21 }
 0x485   :  { %v511_v27 = vrot.slane %v510_v26, 1 }
 0x487   :  { %v512_v28 = vadd.f32 %v511_v27, %v510_v26 }
 0x489   :  { %v513_v29 = vmul.f32 %v512_v28, %v2277_v25 }
 0x48b   :  { %v514_v30 = vsub.f32 %v502_v14, %v513_v29  ;;  %v1876_v14 = vpack.c.bf16 %v794_v4, %v793_v1 }
 0x48d   :  { %v515_v31 = vmul.f32 %v514_v30, %v2232_v23 }
 0x48f   :  { %v516_v32 = vmul.f32 %v515_v31, %v515_v31 }
 0x491   :  { %v517_v34 = vsel %vm301_vm13, %v516_v32, 0.0  ;;  %v556_v32 = vld [vmem:[%s2612_s15] sm:$0x1] }
 0x492   :  { %v518_v35 = vrot.slane %v517_v34, 4 }
 0x494   :  { %v519_v36 = vadd.f32 %v518_v35, %v517_v34  ;;  %v707_v34 = vld [vmem:[%s2642_s17] sm:$0x1] }
 0x496   :  { %v520_v37 = vrot.slane %v519_v36, 2 }
 0x498   :  { %v521_v38 = vadd.f32 %v520_v37, %v519_v36 }
 0x49a   :  { %v522_v41 = vrot.slane %v521_v38, 1 }
 0x49c   :  { %v523_v42 = vadd.f32 %v522_v41, %v521_v38  ;;  %v797_v41 = vld [vmem:[%s2617_s20 + $0x30] sm:$0xff] }
 0x49e   :  { %v524_v43 = vmul.f32 %v523_v42, %v2277_v25  ;;  %v798_v42 = vld [vmem:[%s2617_s20 + $0x38] sm:$0xff] }
 0x4a0   :  { %v525_v44 = vadd.f32 1e-05, %v524_v43  ;;  %v1882_v43 = vpack.c.bf16 %v798_v42, %v797_v41 }
 0x4a2   :  { %1964 = vrsqrt.f32 %v525_v44  ;;  %v880_v44 = vld [vmem:[%s2620_s23] sm:$0xff] }
 0x4ac   :  { %v1965_v45 = vpop.eup %1964 }
 0x4ad   :  { %v527_v47 = vmul.f32 %v1965_v45, %v514_v30  ;;  %v881_v45 = vld [vmem:[%s2620_s23 + $0x8] sm:$0xff] }
 0x4af   :  { %v534_v49 = vmul.f32 %v1608_v46, %v527_v47  ;;  %v882_v46 = vld [vmem:[%s2620_s23 + $0x10] sm:$0xff]  ;;  %v1885_v47 = vpack.c.bf16 %v881_v45, %v880_v44 }
 0x4b1   :  { %v541_v50 = vadd.f32 %v1609_v48, %v534_v49  ;;  %v883_v48 = vld [vmem:[%s2620_s23 + $0x18] sm:$0xff] }
 0x4b2   :  { %v1888_v49 = vpack.c.bf16 %v883_v48, %v882_v46 }
 0x4b3   :  { %v542_v51 = vmax.f32 %v541_v50, 0.0  ;;  %v715_v50 = vld [vmem:[%s2616_s19] sm:$0x1] }
 0x4b5   :  { %v543_v52 = vmul.f32 %v542_v51, %v2232_v23  ;;  %v713_v23 = vld [vmem:[%s2615_s18] sm:$0xff] }
 0x4b6   :  { %v1870_v63 = vpack.c.bf16 %v714_v62, %v713_v23  ;;  %v799_v23 = vld [vmem:[%s2618_s21] sm:$0x1]  ;;  %s2453_s21 = smov 0.0  }
 0x4b7   :  { %v544_v53 = vsel %vm301_vm13, %v543_v52, 0.0 }
 0x4b8   :  { %v545_v54 = vrot.slane %v544_v53, 4 }
 0x4ba   :  { %v546_v56 = vadd.f32 %v545_v54, %v544_v53 }
 0x4bc   :  { %v547_v57 = vrot.slane %v546_v56, 2 }
 0x4be   :  { %v548_v55 = vadd.f32 %v547_v57, %v546_v56  ;;  %v884_v56 = vld [vmem:[%s2620_s23 + $0x20] sm:$0xff]  ;;  %v885_v57 = vld [vmem:[%s2620_s23 + $0x28] sm:$0xff] }
 0x4c0   :  { %v549_v58 = vrot.slane %v548_v55, 1 }
 0x4c2   :  { %v550_v60 = vadd.f32 %v549_v58, %v548_v55  ;;  %v1891_v55 = vpack.c.bf16 %v885_v57, %v884_v56  ;;  %v886_v58 = vld [vmem:[%s2620_s23 + $0x30] sm:$0xff] }
 0x4c4   :  { %v551_v61 = vmul.f32 %v550_v60, %v2277_v25  ;;  %v791_v25 = vld [vmem:[%s2617_s20] sm:$0xff]  ;;  %v887_v60 = vld [vmem:[%s2620_s23 + $0x38] sm:$0xff] }
 0x4c5   :  { %v1873_v2 = vpack.c.bf16 %v792_v0, %v791_v25  ;;  %v874_v0 = vld [vmem:[%s2619_s22] sm:$0xff]  ;;  %s2458_s22 = smov 0  }
 0x4c6   :  { %1750 = vmatmul.mubr.msk.f32.vlgmr.msra.gmra.mrb[4].mxu1 %vm301_vm13, %v551_v61  ;;  %1761 = vmatmul.mubr.msk.f32.vlgmr.msra.gmra.mrb[4].mxu0 %vm301_vm13, %v551_v61  ;;  %v1894_v61 = vpack.c.bf16 %v887_v60, %v886_v58 }
 0x4c7   :  { %1767 = vmatprep.mubr.msk.f32.mxu1 %vm2026_vm10, %v2025_v3  ;;  %1786 = vmatprep.mubr.msk.f32.mxu0 %vm2026_vm10, %v2025_v3 }
 0x4c8   :  { %1871 = vmatpush3.bf16.msra.mxu1 %v1870_v63  ;;  %1874 = vmatpush3.bf16.msra.mxu0 %v1873_v2 }
 0x4c9   :  { %1884 = vmatprep.subr.bf16.mxu1 %v2027_v59  ;;  %1875 = vmatprep.subr.bf16.mxu0 %v2027_v59 }
 0x4cc   :  { %1877 = vmatpush3.bf16.msra.mxu0 %v1876_v14 }
 0x4cd   :  { %1878 = vmatprep.subr.bf16.mxu0 %v2027_v59 }
 0x4d0   :  { %1880 = vmatpush3.bf16.msra.mxu0 %v1879_v19 }
 0x4d1   :  { %1881 = vmatprep.subr.bf16.mxu0 %v2027_v59 }
 0x4d4   :  { %1883 = vmatpush3.bf16.msra.mxu0 %v1882_v43 }
 0x599   :  { %v626_v21 = vpop.f32.mrb[4].mxu1  ;;  %v701_v22 = vpop.f32.mrb[4].mxu0 }
 0x59a   :  { %v2380_v26 = vadd.f32 %v701_v22, %v634_v20  ;;  %v1751_v27 = vpop.f32.mrb[5].mxu1  ;;  %v1762_v28 = vpop.f32.mrb[5].mxu0  ;;  %v2391_v36 = vadd.f32 %v626_v21, %v556_v32 }
 0x59c   :  { %v1612_v29 = vclamps-f32 %v2380_v26, 4.0 }
 0x59e   :  { %v708_v30 = vmul.f32 0.5, %v1612_v29 }
 0x5a0   :  { %v709_v31 = vmul.f32 1.442695, %v708_v30 }
 0x5a2   :  { %1966 = vpow2.f32 %v709_v31 }
 0x5ac   :  { %v1967_v35 = vpop.eup %1966 }
 0x5ad   :  { %v711_v37 = vmul.f32 %v1967_v35, %v707_v34  ;;  %v973_v35 = vpop.xlane.xlu1 %972 }
 0x5af   :  { %v712_v38 = vadd.f32 %v711_v37, %v2391_v36 }
 0x5b1   :  { %1768 = vmatmul.mubr.msk.f32.vlgmr.msra.gmra.mrb[6].mxu1 %vm716_vm14, %v712_v38  ;;  %v974_v38 = vadd.f32 1.0, %v973_v35 }
 0x5b2   :  { %1805 = vmatprep.mubr.msk.f32.mxu1 %vm2026_vm10, %v2025_v3  ;;  %1886 = vmatpush3.bf16.msra.mxu1 %v1885_v47 }
 0x5b3   :  { %1887 = vmatprep.subr.bf16.mxu1 %v2027_v59 }
 0x5b6   :  { %1889 = vmatpush3.bf16.msra.mxu1 %v1888_v49 }
 0x5b7   :  { %1890 = vmatprep.subr.bf16.mxu1 %v2027_v59 }
 0x5ba   :  { %1892 = vmatpush3.bf16.msra.mxu1 %v1891_v55 }
 0x5bb   :  { %1893 = vmatprep.subr.bf16.mxu1 %v2027_v59 }
 0x5be   :  { %1895 = vmatpush3.bf16.msra.mxu1 %v1894_v61 }
 0x684   :  { %v786_v51 = vpop.f32.mrb[6].mxu1 }
 0x685   :  { %v787_v52 = vadd.f32 %v786_v51, %v715_v50  ;;  %v1769_v53 = vpop.f32.mrb[7].mxu1 }
 0x687   :  { %v790_v54 = vmax.f32 %v787_v52, 0.0 }
 0x689   :  { %1787 = vmatmul.mubr.msk.f32.vlgmr.msra.gmra.mrb[6].mxu0 %vm800_vm15, %v790_v54 }
 0x75c   :  { %v870_v62 = vpop.f32.mrb[6].mxu0 }
 0x75d   :  { %v2437_v63 = vadd.f32 %v870_v62, %v799_v23  ;;  %v1788_v25 = vpop.f32.mrb[7].mxu0 }
 0x75f   :  { %v878_v1 = vrot.slane %v2437_v63, %v2220_v17 }
 0x761   :  { %v879_v2 = vmul.f32 %v878_v1, %v874_v0 }
 0x763   :  { %1806 = vmatmul.mubr.msk.f32.vlgmr.msra.gmra.mrb[8].mxu1 %vm800_vm15, %v879_v2 }
 0x836   :  { %v957_v4 = vpop.f32.mrb[8].mxu1 }
 0x837   :  { %v964_v14 = vsub.f32 0.0, %v957_v4  ;;  %v1807_v15 = vpop.f32.mrb[9].mxu1 }
 0x839   :  { %v965_v18 = vmul.f32 1.442695, %v964_v14 }
 0x83b   :  { %1968 = vpow2.f32 %v965_v18 }
 0x845   :  { %v1969_v19 = vpop.eup %1968 }
 0x846   :  { %v967_v20 = vadd.f32 1.0, %v1969_v19 }
 0x848   :  { %1970 = vrcp.f32 %v967_v20 }
 0x852   :  { %v1971_v21 = vpop.eup %1970 }
 0x853   :  { %v2446_v22 = vmul.f32 %v1971_v21, %v2245_v39 }
 0x855   :  { %v975_v27 = vsel %vm107_vm12, %v2446_v22, 0.0 }
 0x856   :  { %v976_v28 = vrot.slane %v975_v27, 4 }
 0x858   :  { %v977_v30 = vadd.f32 %v976_v28, %v975_v27 }
 0x85a   :  { %v978_v31 = vrot.slane %v977_v30, 2 }
 0x85c   :  { %v979_v32 = vadd.f32 %v978_v31, %v977_v30 }
 0x85e   :  { %v980_v34 = vrot.slane %v979_v32, 1 }
 0x860   :  { %v981_v37 = vadd.f32 %v980_v34, %v979_v32 }
 0x862   :  { %v982_v41 = vadd.f32 1.0, %v981_v37 }
 0x864   :  { %v983_v42 = vsub.f32 %v974_v38, %v982_v41 }
 0x866   :  { %v984_v43 = vand.u32 2147483647, %v983_v42 }
 0x868   :  { %v985_v44 = vadd.f32 1.0, %v984_v43 }
 0x86a   :  { %1972 = vrcp.f32 %v985_v44 }
 0x874   :  { %v1973_v45 = vpop.eup %1972 }
 0x875   :  { %v2451_v39 = vmul.f32 %v1973_v45, %v2235_v24 }
 0x876 LB: > { %v1032_v24 = vrot.slane %v2446_v22, %v2220_v17  ;;  %v1051_v46 = vsub.s32 2, %v2217_v16  ;;  %v1041_v47 = vsub.s32 1, %v2217_v16  ;;  %v1061_v48 = vsub.s32 3, %v2217_v16  ;;  %s1215_s13 = ssub.f32 1.0, %s2014_s21  ;;  %s1026_s22 = sadd.s32 1, %s2022_s22   ;;  %s2022_s22 = sphi %s2458_s22, %s1026_s22   ;;  %v2018_v33 = vphi %v2241_v33, %v2644_v33   ;;  %s2014_s21 = sphi %s2453_s21, %s1222_s21  }
 0x877   : > { %v1071_v49 = vsub.s32 4, %v2217_v16  ;;  %v1081_v50 = vsub.s32 5, %v2217_v16  ;;  %v1091_v54 = vsub.s32 6, %v2217_v16  ;;  %v1101_v23 = vsub.s32 7, %v2217_v16  ;;  %p1023_p1 = scmp.ge.s32.totalorder %s1026_s22, 50  }
 0x878   : > { %v1033_v51 = vmul.f32 %v2018_v33, %v1032_v24  ;;  %v1052_v52 = vrot.slane %v2446_v22, %v1051_v46  ;;  %v1042_v53 = vrot.slane %v2446_v22, %v1041_v47  ;;  %v1062_v56 = vrot.slane %v2446_v22, %v1061_v48  ;;  %1896 = vmatprep.subr.bf16.mxu1 (%p1023_p1), %v2027_v59  ;;  %s2032_s4 = smov (%p1023_p1), [#allocation3]  }
 0x879   : > { %v1072_v57 = vrot.slane %v2446_v22, %v1071_v49  ;;  %v1082_v55 = vrot.slane %v2446_v22, %v1081_v50  ;;  %v1092_v2 = vrot.slane %v2446_v22, %v1091_v54  ;;  %v1102_v15 = vrot.slane %v2446_v22, %v1101_v23  ;;  %1817 = vmatprep.mubr.msk.f32.mxu1 (%p1023_p1), %vm2026_vm10, %v2025_v3  ;;  %s1577_s28 = sshll.u32 (%p1023_p1), %s2032_s4, 4  ;;  %s1578_s28 = int_to_ptr.vmem [resolvable:$true] %s1577_s28 }
 0x87a   : > { %v1034_v58 = vsel %vm107_vm12, %v1033_v51, -inf  ;;  %v1053_v60 = vmul.f32 %v2018_v33, %v1052_v52  ;;  %v1043_v61 = vmul.f32 %v2018_v33, %v1042_v53  ;;  %v1063_v62 = vmul.f32 %v2018_v33, %v1062_v56  ;;  %s1976_s9 = scalar_lea.vmem (%p1023_p1), %s1578_s28, 128  ;;  %p1981_p3 = scmp.lt.s32.totalorder (%p1023_p1), %s1578_s28, %s1578_s28 }
 0x87b   : > { %1035 = vmax.xlane.f32.xlu0 %v1034_v58  ;;  %v1073_v1 = vmul.f32 %v2018_v33, %v1072_v57  ;;  %v1083_v14 = vmul.f32 %v2018_v33, %v1082_v55  ;;  %v1093_v19 = vmul.f32 %v2018_v33, %v1092_v2  ;;  %v1103_v21 = vmul.f32 %v2018_v33, %v1102_v15  ;;  %p1977_p2 = scmp.ne.s32.totalorder (%p1023_p1), %s1578_s28, %s1976_s9  ;;  %p1982_p4 = scmp.lt.s32.totalorder (%p1023_p1), %s1976_s9, %s1976_s9 }
 0x87c   : > { %v1054_v25 = vsel %vm107_vm12, %v1053_v60, -inf  ;;  %v1044_v0 = vsel %vm107_vm12, %v1043_v61, -inf  ;;  %v1064_v4 = vsel %vm107_vm12, %v1063_v62, -inf  ;;  %v2028_v30 = vmov 0.0  }
 0x87d   : > { %1055 = vmax.xlane.f32.xlu1 %v1054_v25  ;;  %v1074_v18 = vsel %vm107_vm12, %v1073_v1, -inf  ;;  %v1084_v20 = vsel %vm107_vm12, %v1083_v14, -inf  ;;  %v1094_v27 = vsel %vm107_vm12, %v1093_v19, -inf  ;;  %v1104_v28 = vsel %vm107_vm12, %v1103_v21, -inf  ;;  %1808 = vmatprep.subr.mxu0 %v2028_v30  ;;  %p1983_p5 = por (%p1023_p1), %p1982_p4, %p1981_p3 }
 0x87e   : > { %vm2029_vm0 = vmmov 0   ;;  %v1182_v55 = vmul.f32 %v2018_v33, %v2451_v39  ;;  %vm1224_vm2 = vcmp.eq.s32.totalorder (%p1023_p1), %v2171_v5, %v2217_v16  ;;  %v2030_v17 = vmov (%p1023_p1), 1.0|1.0  }
 0x87f   : > { %1045 = vmax.xlane.f32.xlu0 %v1044_v0  ;;  %1810 = vmatprep.mubr.msk.f32.mxu0 %vm2029_vm0, %v2028_v30  ;;  %v2031_v26 = vmov (%p1023_p1), 1.0   ;;  %p1984_p6 = pnand (%p1023_p1), %p1983_p5, %p1977_p2 }
 0x881   : > { %1065 = vmax.xlane.f32.xlu1 %v1064_v4 }
 0x883   : > { %1075 = vmax.xlane.f32.xlu0 %v1074_v18 }
 0x885   : > { %1085 = vmax.xlane.f32.xlu1 %v1084_v20  ;;  %v1213_v20 = vstv %s2014_s21 }
 0x886   : > { %v1214_v30 = vmul.f32 %v2018_v33, %v1213_v20 }
 0x887   : > { %1095 = vmax.xlane.f32.xlu0 %v1094_v27  ;;  %v1216_v27 = vstv %s1215_s13 }
 0x889   : > { %1105 = vmax.xlane.f32.xlu1 %v1104_v28 }
 0x908   : > { %v1036_v31 = vpop.xlane.xlu0 %1035 }
 0x909   : > { %v1037_v35 = vmul.f32 %v2175_v6, %v1036_v31 }
 0x90a   : > { %v1056_v32 = vpop.xlane.xlu1 %1055 }
 0x90b   : > { %v1057_v41 = vmul.f32 %v2184_v8, %v1056_v32 }
 0x90c   : > { %v1046_v34 = vpop.xlane.xlu0 %1045 }
 0x90d   : > { %v1047_v37 = vmul.f32 %v2181_v7, %v1046_v34 }
 0x90e   : > { %v1066_v38 = vpop.xlane.xlu1 %1065 }
 0x90f   : > { %v1048_v42 = vadd.f32 %v1047_v37, %v1037_v35  ;;  %v1067_v43 = vmul.f32 %v2187_v9, %v1066_v38 }
 0x910   : > { %v1076_v44 = vpop.xlane.xlu0 %1075 }
 0x911   : > { %v1058_v45 = vadd.f32 %v1057_v41, %v1048_v42  ;;  %v1077_v24 = vmul.f32 %v2191_v10, %v1076_v44  ;;  %v1241_v10 = vadd.s32 (%p1023_p1), 48, %v2217_v16 }
 0x912   : > { %v1086_v46 = vpop.xlane.xlu1 %1085 }
 0x913   : > { %v1068_v47 = vadd.f32 %v1067_v43, %v1058_v45  ;;  %v1087_v48 = vmul.f32 %v2197_v11, %v1086_v46  ;;  %v1230_v46 = vadd.s32 (%p1023_p1), 16, %v2217_v16 }
 0x914   : > { %v1096_v49 = vpop.xlane.xlu0 %1095 }
 0x915   : > { %v1078_v50 = vadd.f32 %v1077_v24, %v1068_v47  ;;  %v1097_v51 = vmul.f32 %v2200_v12, %v1096_v49  ;;  %v1239_v47 = vadd.s32 (%p1023_p1), 32, %v2217_v16  ;;  %v1240_v49 = vadd.s32 (%p1023_p1), 40, %v2217_v16 }
 0x916   : > { %v1106_v52 = vpop.xlane.xlu1 %1105  ;;  %vm1232_vm1 = vcmp.eq.s32.totalorder (%p1023_p1), %v2171_v5, %v1230_v46  ;;  %v1244_v8 = vadd.s32 (%p1023_p1), 32, %v1230_v46 }
 0x917   : > { %v1088_v53 = vadd.f32 %v1087_v48, %v1078_v50  ;;  %v1107_v54 = vmul.f32 %v2203_v13, %v1106_v52  ;;  %v1238_v48 = vadd.s32 (%p1023_p1), 24, %v2217_v16  ;;  %vm1250_vm3 = vcmp.eq.s32.totalorder (%p1023_p1), %v2171_v5, %v1239_v47 }
 0x918   :  { %v1246_v11 = vadd.s32 (%p1023_p1), 32, %v1239_v47  ;;  %vm1252_vm8 = vcmp.eq.s32.totalorder (%p1023_p1), %v2171_v5, %v1244_v8  ;;  %v1247_v12 = vadd.s32 (%p1023_p1), 32, %v1240_v49  ;;  %v1242_v13 = vadd.s32 (%p1023_p1), 56, %v2217_v16 }
 0x919   : > { %v1098_v56 = vadd.f32 %v1097_v51, %v1088_v53  ;;  %v1245_v9 = vadd.s32 (%p1023_p1), 32, %v1238_v48 }
 0x91a   :  { %v1249_v22 = vadd.s32 (%p1023_p1), 32, %v1242_v13 }
 0x91b   : > { %v1108_v57 = vadd.f32 %v1107_v54, %v1098_v56  ;;  %vm1253_vm9 = vcmp.eq.s32.totalorder (%p1023_p1), %v2171_v5, %v1245_v9 }
 0x91c   :  { %vm1906_vm0 = vmpackc.low (%p1023_p1), %vm1253_vm9, %vm1252_vm8 }
 0x91d   : > { %1809 = vmatpush3.msra.mxu0 %v1108_v57 }
 0x91e   : > { %1811 = vmatmul.mubr.msk.f32.vlgmr.msra.gmra.mrb[0].mxu0 %vm107_vm12, %v2248_v40  ;;  %1902 = vmatprep.subr.bf16.mxu0 (%p1023_p1), %v2027_v59  ;;  %v1248_v40 = vadd.s32 (%p1023_p1), 32, %v1241_v10 }
 0x91f   :  { %1843 = vmatprep.mubr.msk.f32.mxu0 (%p1023_p1), %vm2026_vm10, %v2025_v3 }
 0x9f1   : > { %v1178_v58 = vpop.f32.mrb[0].mxu0 }
 0x9f2   : > { %v1183_v60 = vadd.f32 %v1182_v55, %v1178_v58  ;;  %v1812_v61 = vpop.f32.mrb[1].mxu0 }
 0x9f4   : > { %v1184_v23 = vmul.f32 %v1183_v60, %v1183_v60 }
 0x9f6   : > { %v1185_v62 = vsel %vm107_vm12, %v1184_v23, 0.0 }
 0x9f7   : > { %1186 = vadd.xlane.f32.xlu0 %v1185_v62 }
 0xa84   : > { %v1187_v25 = vpop.xlane.xlu0 %1186 }
 0xa85   : > { %v1188_v0 = vrot.slane %v1187_v25, 4 }
 0xa87   : > { %v1189_v1 = vadd.f32 %v1188_v0, %v1187_v25 }
 0xa89   : > { %v1190_v2 = vrot.slane %v1189_v1, 2 }
 0xa8b   : > { %v1191_v4 = vadd.f32 %v1190_v2, %v1189_v1 }
 0xa8d   : > { %v1192_v14 = vrot.slane %v1191_v4, 1 }
 0xa8f   : > { %v1193_v15 = vadd.f32 %v1192_v14, %v1191_v4 }
 0xa91   : > { %1917 = vpush %v1193_v15 }
 0xac2   : > { %s1918_s23 = spop %1917 }
 0xac3   : > { %s1195_s12 = sadd.f32 1e-20, %s1918_s23 }
 0xac5   : > { %v1196_v18 = vstv %s1195_s12 }
 0xac6   : > { %1974 = vrsqrt.f32 %v1196_v18 }
 0xad0   : > { %v1975_v19 = vpop.eup %1974 }
 0xad1   : > { %1919 = vpush %v1975_v19 }
 0xb02   : > { %s1920_s15 = spop %1919 }
 0xb03   : > { %v1199_v21 = vstv %s1920_s15 }
 0xb04   : > { %v1200_v28 = vmul.f32 %v1199_v21, %v1183_v60 }
 0xb06   : > { %v1217_v31 = vmul.f32 %v1216_v27, %v1200_v28  ;;  %v1201_v32 = vsub.f32 %v1200_v28, %v2018_v33 }
 0xb08   : > { %v2518_v33 = vadd.f32 %v1217_v31, %v1214_v30   ;;  %v1202_v35 = vand.u32 2147483647, %v1201_v32 }
 0xb0a   : > { %v2643_v34 = vmov %v2518_v33  ;;  %v1203_v37 = vsel %vm107_vm12, %v1202_v35, -inf }
 0xb0b   : > { %1204 = vmax.xlane.f32.xlu1 %v1203_v37  ;;  %v2644_v33 = vmov %v2643_v34 }
 0xb0c   :  { %v1223_v33 = vadd.s32 (%p1023_p1), 8, %v2217_v16 }
 0xb0e   :  { %v1231_v6 = vadd.s32 (%p1023_p1), 16, %v1223_v33  ;;  %v1243_v7 = vadd.s32 (%p1023_p1), 32, %v1223_v33  ;;  %vm1225_vm6 = vcmp.eq.s32.totalorder (%p1023_p1), %v2171_v5, %v1223_v33 }
 0xb0f   :  { %vm1900_vm13 = vmpackc.low (%p1023_p1), %vm1225_vm6, %vm1224_vm2  ;;  %vm1257_vm6 = vcmp.eq.s32.totalorder (%p1023_p1), %v2171_v5, %v1249_v22 }
 0xb10   :  { %vm1233_vm4 = vcmp.eq.s32.totalorder (%p1023_p1), %v2171_v5, %v1231_v6  ;;  %vm1251_vm5 = vcmp.eq.s32.totalorder (%p1023_p1), %v2171_v5, %v1243_v7 }
 0xb11   :  { %vm1897_vm7 = vmpackc.low (%p1023_p1), %vm1233_vm4, %vm1232_vm1  ;;  %vm1254_vm1 = vcmp.eq.s32.totalorder (%p1023_p1), %v2171_v5, %v1246_v11  ;;  %vm1255_vm4 = vcmp.eq.s32.totalorder (%p1023_p1), %v2171_v5, %v1247_v12 }
 0xb12   :  { %1898 = vmatpush3.bf16.msk.msra.mxu1 (%p1023_p1), %vm1897_vm7, %v2030_v17  ;;  %vm1903_vm11 = vmpackc.low (%p1023_p1), %vm1251_vm5, %vm1250_vm3  ;;  %vm1256_vm5 = vcmp.eq.s32.totalorder (%p1023_p1), %v2171_v5, %v1248_v40 }
 0xb13   :  { %1904 = vmatpush3.bf16.msk.msra.mxu0 (%p1023_p1), %vm1903_vm11, %v2030_v17  ;;  %1899 = vmatprep.subr.bf16.mxu1 (%p1023_p1), %v2027_v59  ;;  %vm1909_vm3 = vmpackc.low (%p1023_p1), %vm1255_vm4, %vm1254_vm1 }
 0xb14   :  { %1905 = vmatprep.subr.bf16.mxu0 (%p1023_p1), %v2027_v59  ;;  %vm1912_vm7 = vmpackc.low (%p1023_p1), %vm1257_vm6, %vm1256_vm5 }
 0xb15   :  { %1818 = vmatmul.mubr.msk.f32.vlgmr.msra.gmra.mrb[0].mxu1 (%p1023_p1), %vm716_vm14, %v1612_v29 }
 0xb16   :  { %1901 = vmatpush3.bf16.msk.msra.mxu1 (%p1023_p1), %vm1900_vm13, %v2030_v17  ;;  %1824 = vmatprep.mubr.msk.f32.mxu1 (%p1023_p1), %vm2026_vm10, %v2025_v3 }
 0xb17   :  { %1907 = vmatpush3.bf16.msk.msra.mxu0 (%p1023_p1), %vm1906_vm0, %v2030_v17  ;;  %1846 = vmatprep.subr.mxu1 (%p1023_p1), %v2025_v3 }
 0xb18   :  { %1908 = vmatprep.subr.bf16.mxu0 (%p1023_p1), %v2027_v59 }
 0xb1b   :  { %1910 = vmatpush3.bf16.msk.msra.mxu0 (%p1023_p1), %vm1909_vm3, %v2030_v17 }
 0xb1c   :  { %1911 = vmatprep.subr.bf16.mxu0 (%p1023_p1), %v2027_v59 }
 0xb1d   :  { %1825 = vmatmul.mubr.msk.f32.vlgmr.msra.gmra.mrb[0].mxu1 (%p1023_p1), %vm716_vm14, %v2391_v36 }
 0xb1e   :  { %1847 = vmatpush3.msk.msra.mxu1 (%p1023_p1), %vm1224_vm2, %v2031_v26  ;;  %1848 = vmatprep.mubr.msk.f32.mxu1 (%p1023_p1), %vm2026_vm10, %v2025_v3 }
 0xb1f   :  { %1913 = vmatpush3.bf16.msk.msra.mxu0 (%p1023_p1), %vm1912_vm7, %v2030_v17 }
 0xb21   :  { %1849 = vmatmul.mubr.msk.f32.vlgmr.msra.gmra.mrb[2].mxu1 (%p1023_p1), %vm107_vm12, %v2643_v34 }
 0xb22   :  { %1844 = vmatmul.mubr.msk.f32.vlgmr.msra.gmra.mrb[0].mxu0 (%p1023_p1), %vm800_vm15, %v2437_v63 }
 0xb98   : > { %v1205_v38 = vpop.xlane.xlu1 %1204 }
 0xb99   : > { %v1206_v41 = vrot.slane %v1205_v38, 4 }
 0xb9b   : > { %v1207_v42 = vmax.f32 %v1205_v38, %v1206_v41 }
 0xb9d   : > { %v1208_v43 = vrot.slane %v1207_v42, 2 }
 0xb9f   : > { %v1209_v44 = vmax.f32 %v1207_v42, %v1208_v43 }
 0xba1   : > { %v1210_v45 = vrot.slane %v1209_v44, 1 }
 0xba3   : > { %v1211_v24 = vmax.f32 %v1209_v44, %v1210_v45 }
 0xba5   : > { %1921 = vpush %v1211_v24 }
 0xbd6   : > { %s1922_s1 = spop %1921 }
 0xbd7   : > { %p1219_p0 = scmp.lt.f32.partialorder %s1922_s1, 0.0001  ;;  %1025 = sbr.rel (!%p1023_p1) target bundleno = 2166 (0x876), region = 131 }
 0xbd9   : > { %s1220_s8 = scalar_select %p1219_p0, 1, 0 }
 0xbdb   : > { %s1221_s27 = scvt.s32.f32 %s1220_s8 }
 0xbdd   : > { %s1222_s21 = smax.f32 %s2014_s21, %s1221_s27  }
 0xbf0   :  { %v1416_v59 = vpop.f32.mrb[0].mxu1 }
 0xbf1   :  { %v1826_v29 = vpop.f32.mrb[1].mxu1 }
 0xbf4   :  { %v1564_v36 = vpop.f32.mrb[2].mxu1 }
 0xbf5   :  { %v1489_v39 = vpop.f32.mrb[0].mxu0  ;;  %1568 = vst [vmem:[#allocation3] sm:$0xff] %v1564_v36  ;;  %v1850_v5 = vpop.f32.mrb[3].mxu1 }
 0xbf6   :  { %v1914_v16 = vadd.f32 %v1489_v39, %v1416_v59  ;;  %v1845_v50 = vpop.f32.mrb[1].mxu0 }
 0xbf7   :  { %1987 = shalt.err (!%p1984_p6)
}
 0xbf8   :  { %s1988_s0 = scalar_lea.hbm %s2622_s25, 128 }
 0xbf9   :  { %p1989_p7 = scmp.ne.s32.totalorder %s2622_s25, %s1988_s0  ;;  %p1992_p8 = scmp.lt.u32.totalorder %s1988_s0, %s2622_s25 }
 0xbfb   :  { %p1994_p9 = pnand %p1992_p8, %p1989_p7 }
 0xbfd   :  { %1997 = shalt.err (!%p1994_p9)
}
 0xbfe   :  { %1580 = dma.vmem_to_hbm [thread:$0]  %s1578_s28, 128, %s2622_s25, [#allocation4]   ;;  %1494 = vst [vmem:[%s2621_s24] sm:$0x1] %v1914_v16 }
 0xbff   :  { %2010 = dma.done.wait [#allocation4], 128  }
 0xc00   :  { %2011 = vsyncadd [#allocation4], 4294967168 }
 0xc01   :  { %1586 = vsyncpa [#allocation4], 1 }

</bundles_post_ra>
